<compile_context>
chip_gen: v6e
topology: v6e:2x2x1
jax: 0.10.0
libtpu: 0.0.40
codegen_flags: <defaults>
</compile_context>

<pallas_src>
import functools
import numpy as np
import jax
import jax.numpy as jnp
from jax.experimental import pallas as pl
from jax.experimental.pallas import tpu as pltpu


# ----------------------- Kernel 1: [DenseNorm] + dense1 + dense2 (fused) ----------------------

def _dense_kernel(x_ref, w1_ref, b1_ref, w2_ref, b2_ref, o_ref, *, likeness):
    # x_ref : (N, in_ch) f32        w1_ref: (in_ch, ae_ch) bf16   b1_ref: (1, ae_ch) f32
    # w2_ref: (ae_ch, TN) bf16      b2_ref: (1, TN) f32           o_ref : (N, TN) bf16
    x = x_ref[...]
    if likeness:  # DenseNorm fused (static python flag), exact f32
        x = x * jax.lax.rsqrt(jnp.mean(x * x, axis=-1, keepdims=True) + 1e-6)
    h = jnp.dot(x.astype(jnp.bfloat16), w1_ref[...],
                preferred_element_type=jnp.float32) + b1_ref[...]
    o = jnp.dot(h.astype(jnp.bfloat16), w2_ref[...],
                preferred_element_type=jnp.float32) + b2_ref[...]
    o_ref[...] = o.astype(o_ref.dtype)


def _pick_col_tile(D):
    for t in (1024, 512, 256, 128):
        if D % t == 0:
            return t
    return D


def _fused_dense(x, w1, b1, w2, b2, *, likeness):
    N, in_ch = x.shape
    ae_ch = w1.shape[1]
    D2 = w2.shape[1]
    TN = _pick_col_tile(D2)
    grid_n = D2 // TN
    kernel = functools.partial(_dense_kernel, likeness=likeness)
    return pl.pallas_call(
        kernel,
        out_shape=jax.ShapeDtypeStruct((N, D2), jnp.bfloat16),
        grid=(grid_n,),
        in_specs=[
            pl.BlockSpec((N, in_ch), lambda j: (0, 0)),      # x     (resident, f32)
            pl.BlockSpec((in_ch, ae_ch), lambda j: (0, 0)),  # W1    (resident, bf16)
            pl.BlockSpec((1, ae_ch), lambda j: (0, 0)),      # b1    (resident, f32)
            pl.BlockSpec((ae_ch, TN), lambda j: (0, j)),     # W2 column tile (bf16)
            pl.BlockSpec((1, TN), lambda j: (0, j)),         # b2 column tile (f32)
        ],
        out_specs=pl.BlockSpec((N, TN), lambda j: (0, j)),
        compiler_params=pltpu.CompilerParams(dimension_semantics=("parallel",)),
        cost_estimate=pl.CostEstimate(
            flops=int(2 * N * in_ch * ae_ch * grid_n + 2 * N * ae_ch * D2),
            transcendentals=0,
            bytes_accessed=int(4 * x.size + 2 * (w1.size + w2.size + N * D2)
                               + 4 * (b1.size + b2.size)),
        ),
    )(x, w1, b1, w2, b2)


# --------------------- Kernel 2: Upscale conv 3x3 + bias + LeakyReLU(0.1) ---------------------

def _conv3x3_kernel(x_ref, w_ref, b_ref, o_ref, *, R):
    # x_ref: (1, R+2, R+2, Cin) bf16 (padded NHWC)   w_ref: (9, Cin, C4) bf16
    # b_ref: (1, C4) f32                             o_ref: (1, R*R, C4) f32
    Cin = x_ref.shape[3]
    C4 = o_ref.shape[2]
    acc = jnp.zeros((R * R, C4), jnp.float32)
    for kh in range(3):           # 9 shifted matmuls accumulated in f32 (no im2col buffer)
        for kw in range(3):
            win = x_ref[0, kh:kh + R, kw:kw + R, :].reshape(R * R, Cin)
            acc = acc + jnp.dot(win, w_ref[kh * 3 + kw],
                                preferred_element_type=jnp.float32)
    acc = acc + b_ref[...]
    acc = jnp.where(acc >= 0, acc, 0.1 * acc)       # LeakyReLU(0.1)
    o_ref[...] = acc[None].astype(o_ref.dtype)


def _upscale_conv(xpad, wmat, bias, *, R):
    N, Hp, Wp, Cin = xpad.shape
    C4 = wmat.shape[2]
    kernel = functools.partial(_conv3x3_kernel, R=R)
    return pl.pallas_call(
        kernel,
        out_shape=jax.ShapeDtypeStruct((N, R * R, C4), jnp.float32),
        grid=(N,),
        in_specs=[
            pl.BlockSpec((1, Hp, Wp, Cin), lambda n: (n, 0, 0, 0)),
            pl.BlockSpec((9, Cin, C4), lambda n: (0, 0, 0)),
            pl.BlockSpec((1, C4), lambda n: (0, 0)),
        ],
        out_specs=pl.BlockSpec((1, R * R, C4), lambda n: (n, 0, 0)),
        compiler_params=pltpu.CompilerParams(dimension_semantics=("parallel",)),
        cost_estimate=pl.CostEstimate(
            flops=int(2 * N * R * R * 9 * Cin * C4),
            transcendentals=0,
            bytes_accessed=int(2 * xpad.size + 2 * wmat.size
                               + 4 * (bias.size + N * R * R * C4)),
        ),
    )(xpad, wmat, bias)


# ----------------------------------- Inter forward pass --------------------------------------

def inter_forward(inp, params, *, ae_out_ch, lowest_dense_res, likeness=False):
    N = inp.shape[0]
    C = ae_out_ch
    R = lowest_dense_res
    ae_ch = params["w1"].shape[0]

    # dense1 + dense2 (+ optional DenseNorm), one Pallas call, bf16 MXU / f32 accum.
    # W2 columns are permuted from torch's (c, h, w) order to (h, w, c) so the dense output is
    # already flat NHWC -> no transpose between the two kernels (reshape is free).
    x = inp.astype(jnp.float32)
    w1 = params["w1"].T.astype(jnp.bfloat16)                              # (in_ch, ae_ch)
    b1 = params["b1"].reshape(1, -1).astype(jnp.float32)
    w2 = (params["w2"].reshape(C, R * R, ae_ch).transpose(1, 0, 2)
          .reshape(R * R * C, ae_ch).T.astype(jnp.bfloat16))              # (ae_ch, R*R*C)
    b2 = params["b2"].reshape(C, R * R).T.reshape(1, R * R * C).astype(jnp.float32)
    y = _fused_dense(x, w1, b1, w2, b2, likeness=likeness)                # (N, R*R*C) bf16, hwC

    # torch.reshape(x, (-1, C, R, R)) followed by the conv, expressed in NHWC (channels on lanes)
    y = y.reshape(N, R, R, C)
    y = jnp.pad(y, ((0, 0), (1, 1), (1, 1), (0, 0)))                      # SAME pad for 3x3

    # Upscale conv: weights (4C, C, 3, 3) -> (9, C, 4C) matching the kernel's tap order
    wc = params["wc"].transpose(2, 3, 1, 0).reshape(9, C, 4 * C).astype(jnp.bfloat16)
    bc = params["bc"].reshape(1, -1).astype(jnp.float32)
    z = _upscale_conv(y, wc, bc, R=R)                                     # (N, R*R, 4C) f32

    # PixelShuffle(2) + back to NCHW (tiny tensor, plain-JAX glue)
    z = z.reshape(N, R, R, C, 2, 2).transpose(0, 3, 1, 4, 2, 5)
    return z.reshape(N, C, 2 * R, 2 * R)


# ------------------------------------- reference & init --------------------------------------

def reference_forward(inp, params, ae_out_ch, lowest_dense_res, likeness=False):
    # pure-JAX f32 reference with the PyTorch module's semantics
    x = inp
    if likeness:
        x = x * jax.lax.rsqrt(jnp.mean(jnp.square(x), axis=-1, keepdims=True) + 1e-6)
    x = x @ params["w1"].T + params["b1"]
    x = x @ params["w2"].T + params["b2"]
    R = lowest_dense_res
    x = x.reshape(-1, ae_out_ch, R, R)
    y = jax.lax.conv_general_dilated(
        x, params["wc"], window_strides=(1, 1), padding=((1, 1), (1, 1)),
        dimension_numbers=("NCHW", "OIHW", "NCHW"))
    y = y + params["bc"].reshape(1, -1, 1, 1)
    y = jnp.where(y >= 0, y, 0.1 * y)
    N, C4, H, W = y.shape
    C = C4 // 4
    y = y.reshape(N, C, 2, 2, H, W).transpose(0, 1, 4, 2, 5, 3)   # torch pixel_shuffle(2)
    return y.reshape(N, C, H * 2, W * 2)


def init_inter_params(key, in_ch, ae_ch, ae_out_ch, lowest_dense_res):
    D2 = ae_out_ch * lowest_dense_res ** 2
    k1, k2, k3, k4, k5, k6 = jax.random.split(key, 6)
    params = {
        "w1": jax.random.normal(k1, (ae_ch, in_ch), jnp.float32) / np.sqrt(in_ch),
        "b1": jax.random.normal(k2, (ae_ch,), jnp.float32) * 0.01,
        "w2": jax.random.normal(k3, (D2, ae_ch), jnp.float32) / np.sqrt(ae_ch),
        "b2": jax.random.normal(k4, (D2,), jnp.float32) * 0.01,
        "wc": jax.random.normal(k5, (4 * ae_out_ch, ae_out_ch, 3, 3), jnp.float32)
              / np.sqrt(ae_out_ch * 9),
        "bc": jax.random.normal(k6, (4 * ae_out_ch,), jnp.float32) * 0.01,
    }
    return params


if __name__ == "__main__":
    key = jax.random.PRNGKey(0)
    kx, kp = jax.random.split(key)

    # small shapes: batch=2, in_ch=256, ae_ch=128, ae_out_ch=32, lowest_dense_res=8
    N, in_ch, ae_ch, ae_out_ch, R = 2, 256, 128, 32, 8
    inp = jax.random.normal(kx, (N, in_ch), jnp.float32)
    params = init_inter_params(kp, in_ch, ae_ch, ae_out_ch, R)

    # default path (likeness=False)
    fwd = jax.jit(functools.partial(inter_forward, ae_out_ch=ae_out_ch,
                                    lowest_dense_res=R, likeness=False))
    out = jax.block_until_ready(fwd(inp, params))
    assert out.shape == (N, ae_out_ch, 2 * R, 2 * R), out.shape
    ref = reference_forward(inp, params, ae_out_ch, R, likeness=False)
    # bf16 MXU operands with f32 accumulation vs pure-f32 reference
    np.testing.assert_allclose(np.asarray(out), np.asarray(ref), rtol=2e-2, atol=2e-2)

    # likeness=True path (DenseNorm fused into the dense kernel)
    fwd_l = jax.jit(functools.partial(inter_forward, ae_out_ch=ae_out_ch,
                                      lowest_dense_res=R, likeness=True))
    out_l = jax.block_until_ready(fwd_l(inp, params))
    ref_l = reference_forward(inp, params, ae_out_ch, R, likeness=True)
    np.testing.assert_allclose(np.asarray(out_l), np.asarray(ref_l), rtol=2e-2, atol=2e-2)

    print("KERNEL_OK")
</pallas_src>

<mosaic_0001>
module attributes {stable_mosaic.version = 11 : i64} {
  func.func @_dense_kernel(%arg0: i32, %arg1: memref<2x256xf32, #tpu.memory_space<vmem>>, %arg2: memref<256x128xbf16, #tpu.memory_space<vmem>>, %arg3: memref<1x128xf32, #tpu.memory_space<vmem>>, %arg4: memref<128x1024xbf16, #tpu.memory_space<vmem>>, %arg5: memref<1x1024xf32, #tpu.memory_space<vmem>>, %arg6: memref<2x1024xbf16, #tpu.memory_space<vmem>>) attributes {dimension_semantics = [#tpu.dimension_semantics<parallel>], iteration_bounds = array<i64: 2>, scalar_prefetch = 0 : i64, scratch_operands = 0 : i64, tpu.core_type = #tpu.core_type<tc>, window_params = [{pipeline_mode = #tpu.pipeline_mode<synchronous>, transform_indices = @transform_0, window_bounds = array<i64: 2, 256>}, {pipeline_mode = #tpu.pipeline_mode<synchronous>, transform_indices = @transform_1, window_bounds = array<i64: 256, 128>}, {pipeline_mode = #tpu.pipeline_mode<synchronous>, transform_indices = @transform_2, window_bounds = array<i64: 1, 128>}, {transform_indices = @transform_3, window_bounds = array<i64: 128, 1024>}, {transform_indices = @transform_4, window_bounds = array<i64: 1, 1024>}, {transform_indices = @transform_5, window_bounds = array<i64: 2, 1024>}]} {
    %c0 = arith.constant 0 : index
    %c0_0 = arith.constant 0 : index
    %0 = vector.load %arg1[%c0, %c0_0] : memref<2x256xf32, #tpu.memory_space<vmem>>, vector<2x256xf32>
    %1 = arith.truncf %0 : vector<2x256xf32> to vector<2x256xbf16>
    %c0_1 = arith.constant 0 : index
    %c0_2 = arith.constant 0 : index
    %2 = vector.load %arg2[%c0_1, %c0_2] : memref<256x128xbf16, #tpu.memory_space<vmem>>, vector<256x128xbf16>
    %cst = arith.constant dense<0.000000e+00> : vector<2x128xf32>
    %3 = tpu.matmul %1, %2, %cst {dimension_numbers = #tpu.dot_dimension_numbers<[1], [0], [0], [1], [0, 0, 1, 1], [], []>} : vector<2x256xbf16>, vector<256x128xbf16>, vector<2x128xf32> -> vector<2x128xf32>
    %c0_3 = arith.constant 0 : index
    %c0_4 = arith.constant 0 : index
    %4 = vector.load %arg3[%c0_3, %c0_4] : memref<1x128xf32, #tpu.memory_space<vmem>>, vector<1x128xf32>
    %5 = vector.broadcast %4 : vector<1x128xf32> to vector<2x128xf32>
    %6 = arith.addf %3, %5 : vector<2x128xf32>
    %7 = arith.truncf %6 : vector<2x128xf32> to vector<2x128xbf16>
    %c0_5 = arith.constant 0 : index
    %c0_6 = arith.constant 0 : index
    %8 = vector.load %arg4[%c0_5, %c0_6] : memref<128x1024xbf16, #tpu.memory_space<vmem>>, vector<128x1024xbf16>
    %cst_7 = arith.constant dense<0.000000e+00> : vector<2x1024xf32>
    %9 = tpu.matmul %7, %8, %cst_7 {dimension_numbers = #tpu.dot_dimension_numbers<[1], [0], [0], [1], [0, 0, 1, 1], [], []>} : vector<2x128xbf16>, vector<128x1024xbf16>, vector<2x1024xf32> -> vector<2x1024xf32>
    %c0_8 = arith.constant 0 : index
    %c0_9 = arith.constant 0 : index
    %10 = vector.load %arg5[%c0_8, %c0_9] : memref<1x1024xf32, #tpu.memory_space<vmem>>, vector<1x1024xf32>
    %11 = vector.broadcast %10 : vector<1x1024xf32> to vector<2x1024xf32>
    %12 = arith.addf %9, %11 : vector<2x1024xf32>
    %13 = arith.truncf %12 : vector<2x1024xf32> to vector<2x1024xbf16>
    %c0_10 = arith.constant 0 : index
    %c0_11 = arith.constant 0 : index
    %14 = vector.load %arg6[%c0_10, %c0_11] : memref<2x1024xbf16, #tpu.memory_space<vmem>>, vector<2x1024xbf16>
    tpu.vector_store %arg6[%c0_10, %c0_11], %13 {strides = array<i32>} : memref<2x1024xbf16, #tpu.memory_space<vmem>>, vector<2x1024xbf16>,
    return
  }
  func.func @transform_0(%arg0: i32) -> (i32, i32) {
    %c0_i32 = arith.constant 0 : i32
    %c0_i32_0 = arith.constant 0 : i32
    %c0_i32_1 = arith.constant 0 : i32
    return %c0_i32, %c0_i32_0 : i32, i32
  }
  func.func @transform_1(%arg0: i32) -> (i32, i32) {
    %c0_i32 = arith.constant 0 : i32
    %c0_i32_0 = arith.constant 0 : i32
    %c0_i32_1 = arith.constant 0 : i32
    return %c0_i32, %c0_i32_0 : i32, i32
  }
  func.func @transform_2(%arg0: i32) -> (i32, i32) {
    %c0_i32 = arith.constant 0 : i32
    %c0_i32_0 = arith.constant 0 : i32
    %c0_i32_1 = arith.constant 0 : i32
    return %c0_i32, %c0_i32_0 : i32, i32
  }
  func.func @transform_3(%arg0: i32) -> (i32, i32) {
    %c0_i32 = arith.constant 0 : i32
    %c0_i32_0 = arith.constant 0 : i32
    return %c0_i32, %arg0 : i32, i32
  }
  func.func @transform_4(%arg0: i32) -> (i32, i32) {
    %c0_i32 = arith.constant 0 : i32
    %c0_i32_0 = arith.constant 0 : i32
    return %c0_i32, %arg0 : i32, i32
  }
  func.func @transform_5(%arg0: i32) -> (i32, i32) {
    %c0_i32 = arith.constant 0 : i32
    %c0_i32_0 = arith.constant 0 : i32
    return %c0_i32, %arg0 : i32, i32
  }
}

module attributes {stable_mosaic.version = 11 : i64} {
  func.func @_conv3x3_kernel(%arg0: i32, %arg1: memref<1x10x10x32xbf16, #tpu.memory_space<vmem>>, %arg2: memref<9x32x128xbf16, #tpu.memory_space<vmem>>, %arg3: memref<1x128xf32, #tpu.memory_space<vmem>>, %arg4: memref<1x64x128xf32, #tpu.memory_space<vmem>>) attributes {dimension_semantics = [#tpu.dimension_semantics<parallel>], iteration_bounds = array<i64: 2>, scalar_prefetch = 0 : i64, scratch_operands = 0 : i64, tpu.core_type = #tpu.core_type<tc>, window_params = [{transform_indices = @transform_0, window_bounds = array<i64: 1, 10, 10, 32>}, {pipeline_mode = #tpu.pipeline_mode<synchronous>, transform_indices = @transform_1, window_bounds = array<i64: 9, 32, 128>}, {pipeline_mode = #tpu.pipeline_mode<synchronous>, transform_indices = @transform_2, window_bounds = array<i64: 1, 128>}, {transform_indices = @transform_3, window_bounds = array<i64: 1, 64, 128>}]} {
    %cst = arith.constant 0.000000e+00 : f32
    %0 = vector.broadcast %cst : f32 to vector<64x128xf32>
    %c0 = arith.constant 0 : index
    %c0_0 = arith.constant 0 : index
    %c0_1 = arith.constant 0 : index
    %c0_2 = arith.constant 0 : index
    %1 = vector.load %arg1[%c0, %c0_0, %c0_1, %c0_2] : memref<1x10x10x32xbf16, #tpu.memory_space<vmem>>, vector<1x8x8x32xbf16>
    %2 = vector.shape_cast %1 : vector<1x8x8x32xbf16> to vector<8x8x32xbf16>
    %3 = vector.shape_cast %2 : vector<8x8x32xbf16> to vector<64x32xbf16>
    %c0_3 = arith.constant 0 : index
    %c0_4 = arith.constant 0 : index
    %c0_5 = arith.constant 0 : index
    %4 = vector.load %arg2[%c0_3, %c0_4, %c0_5] : memref<9x32x128xbf16, #tpu.memory_space<vmem>>, vector<1x32x128xbf16>
    %5 = vector.shape_cast %4 : vector<1x32x128xbf16> to vector<32x128xbf16>
    %cst_6 = arith.constant dense<0.000000e+00> : vector<64x128xf32>
    %6 = tpu.matmul %3, %5, %cst_6 {dimension_numbers = #tpu.dot_dimension_numbers<[1], [0], [0], [1], [0, 0, 1, 1], [], []>} : vector<64x32xbf16>, vector<32x128xbf16>, vector<64x128xf32> -> vector<64x128xf32>
    %7 = arith.addf %0, %6 : vector<64x128xf32>
    %c0_7 = arith.constant 0 : index
    %c0_8 = arith.constant 0 : index
    %c1 = arith.constant 1 : index
    %c0_9 = arith.constant 0 : index
    %8 = vector.load %arg1[%c0_7, %c0_8, %c1, %c0_9] : memref<1x10x10x32xbf16, #tpu.memory_space<vmem>>, vector<1x8x8x32xbf16>
    %9 = vector.shape_cast %8 : vector<1x8x8x32xbf16> to vector<8x8x32xbf16>
    %10 = vector.shape_cast %9 : vector<8x8x32xbf16> to vector<64x32xbf16>
    %c1_10 = arith.constant 1 : index
    %c0_11 = arith.constant 0 : index
    %c0_12 = arith.constant 0 : index
    %11 = vector.load %arg2[%c1_10, %c0_11, %c0_12] : memref<9x32x128xbf16, #tpu.memory_space<vmem>>, vector<1x32x128xbf16>
    %12 = vector.shape_cast %11 : vector<1x32x128xbf16> to vector<32x128xbf16>
    %cst_13 = arith.constant dense<0.000000e+00> : vector<64x128xf32>
    %13 = tpu.matmul %10, %12, %cst_13 {dimension_numbers = #tpu.dot_dimension_numbers<[1], [0], [0], [1], [0, 0, 1, 1], [], []>} : vector<64x32xbf16>, vector<32x128xbf16>, vector<64x128xf32> -> vector<64x128xf32>
    %14 = arith.addf %7, %13 : vector<64x128xf32>
    %c0_14 = arith.constant 0 : index
    %c0_15 = arith.constant 0 : index
    %c2 = arith.constant 2 : index
    %c0_16 = arith.constant 0 : index
    %15 = vector.load %arg1[%c0_14, %c0_15, %c2, %c0_16] : memref<1x10x10x32xbf16, #tpu.memory_space<vmem>>, vector<1x8x8x32xbf16>
    %16 = vector.shape_cast %15 : vector<1x8x8x32xbf16> to vector<8x8x32xbf16>
    %17 = vector.shape_cast %16 : vector<8x8x32xbf16> to vector<64x32xbf16>
    %c2_17 = arith.constant 2 : index
    %c0_18 = arith.constant 0 : index
    %c0_19 = arith.constant 0 : index
    %18 = vector.load %arg2[%c2_17, %c0_18, %c0_19] : memref<9x32x128xbf16, #tpu.memory_space<vmem>>, vector<1x32x128xbf16>
    %19 = vector.shape_cast %18 : vector<1x32x128xbf16> to vector<32x128xbf16>
    %cst_20 = arith.constant dense<0.000000e+00> : vector<64x128xf32>
    %20 = tpu.matmul %17, %19, %cst_20 {dimension_numbers = #tpu.dot_dimension_numbers<[1], [0], [0], [1], [0, 0, 1, 1], [], []>} : vector<64x32xbf16>, vector<32x128xbf16>, vector<64x128xf32> -> vector<64x128xf32>
    %21 = arith.addf %14, %20 : vector<64x128xf32>
    %c0_21 = arith.constant 0 : index
    %c1_22 = arith.constant 1 : index
    %c0_23 = arith.constant 0 : index
    %c0_24 = arith.constant 0 : index
    %22 = vector.load %arg1[%c0_21, %c1_22, %c0_23, %c0_24] : memref<1x10x10x32xbf16, #tpu.memory_space<vmem>>, vector<1x8x8x32xbf16>
    %23 = vector.shape_cast %22 : vector<1x8x8x32xbf16> to vector<8x8x32xbf16>
    %24 = vector.shape_cast %23 : vector<8x8x32xbf16> to vector<64x32xbf16>
    %c3 = arith.constant 3 : index
    %c0_25 = arith.constant 0 : index
    %c0_26 = arith.constant 0 : index
    %25 = vector.load %arg2[%c3, %c0_25, %c0_26] : memref<9x32x128xbf16, #tpu.memory_space<vmem>>, vector<1x32x128xbf16>
    %26 = vector.shape_cast %25 : vector<1x32x128xbf16> to vector<32x128xbf16>
    %cst_27 = arith.constant dense<0.000000e+00> : vector<64x128xf32>
    %27 = tpu.matmul %24, %26, %cst_27 {dimension_numbers = #tpu.dot_dimension_numbers<[1], [0], [0], [1], [0, 0, 1, 1], [], []>} : vector<64x32xbf16>, vector<32x128xbf16>, vector<64x128xf32> -> vector<64x128xf32>
    %28 = arith.addf %21, %27 : vector<64x128xf32>
    %c0_28 = arith.constant 0 : index
    %c1_29 = arith.constant 1 : index
    %c1_30 = arith.constant 1 : index
    %c0_31 = arith.constant 0 : index
    %29 = vector.load %arg1[%c0_28, %c1_29, %c1_30, %c0_31] : memref<1x10x10x32xbf16, #tpu.memory_space<vmem>>, vector<1x8x8x32xbf16>
    %30 = vector.shape_cast %29 : vector<1x8x8x32xbf16> to vector<8x8x32xbf16>
    %31 = vector.shape_cast %30 : vector<8x8x32xbf16> to vector<64x32xbf16>
    %c4 = arith.constant 4 : index
    %c0_32 = arith.constant 0 : index
    %c0_33 = arith.constant 0 : index
    %32 = vector.load %arg2[%c4, %c0_32, %c0_33] : memref<9x32x128xbf16, #tpu.memory_space<vmem>>, vector<1x32x128xbf16>
    %33 = vector.shape_cast %32 : vector<1x32x128xbf16> to vector<32x128xbf16>
    %cst_34 = arith.constant dense<0.000000e+00> : vector<64x128xf32>
    %34 = tpu.matmul %31, %33, %cst_34 {dimension_numbers = #tpu.dot_dimension_numbers<[1], [0], [0], [1], [0, 0, 1, 1], [], []>} : vector<64x32xbf16>, vector<32x128xbf16>, vector<64x128xf32> -> vector<64x128xf32>
    %35 = arith.addf %28, %34 : vector<64x128xf32>
    %c0_35 = arith.constant 0 : index
    %c1_36 = arith.constant 1 : index
    %c2_37 = arith.constant 2 : index
    %c0_38 = arith.constant 0 : index
    %36 = vector.load %arg1[%c0_35, %c1_36, %c2_37, %c0_38] : memref<1x10x10x32xbf16, #tpu.memory_space<vmem>>, vector<1x8x8x32xbf16>
    %37 = vector.shape_cast %36 : vector<1x8x8x32xbf16> to vector<8x8x32xbf16>
    %38 = vector.shape_cast %37 : vector<8x8x32xbf16> to vector<64x32xbf16>
    %c5 = arith.constant 5 : index
    %c0_39 = arith.constant 0 : index
    %c0_40 = arith.constant 0 : index
    %39 = vector.load %arg2[%c5, %c0_39, %c0_40] : memref<9x32x128xbf16, #tpu.memory_space<vmem>>, vector<1x32x128xbf16>
    %40 = vector.shape_cast %39 : vector<1x32x128xbf16> to vector<32x128xbf16>
    %cst_41 = arith.constant dense<0.000000e+00> : vector<64x128xf32>
    %41 = tpu.matmul %38, %40, %cst_41 {dimension_numbers = #tpu.dot_dimension_numbers<[1], [0], [0], [1], [0, 0, 1, 1], [], []>} : vector<64x32xbf16>, vector<32x128xbf16>, vector<64x128xf32> -> vector<64x128xf32>
    %42 = arith.addf %35, %41 : vector<64x128xf32>
    %c0_42 = arith.constant 0 : index
    %c2_43 = arith.constant 2 : index
    %c0_44 = arith.constant 0 : index
    %c0_45 = arith.constant 0 : index
    %43 = vector.load %arg1[%c0_42, %c2_43, %c0_44, %c0_45] : memref<1x10x10x32xbf16, #tpu.memory_space<vmem>>, vector<1x8x8x32xbf16>
    %44 = vector.shape_cast %43 : vector<1x8x8x32xbf16> to vector<8x8x32xbf16>
    %45 = vector.shape_cast %44 : vector<8x8x32xbf16> to vector<64x32xbf16>
    %c6 = arith.constant 6 : index
    %c0_46 = arith.constant 0 : index
    %c0_47 = arith.constant 0 : index
    %46 = vector.load %arg2[%c6, %c0_46, %c0_47] : memref<9x32x128xbf16, #tpu.memory_space<vmem>>, vector<1x32x128xbf16>
    %47 = vector.shape_cast %46 : vector<1x32x128xbf16> to vector<32x128xbf16>
    %cst_48 = arith.constant dense<0.000000e+00> : vector<64x128xf32>
    %48 = tpu.matmul %45, %47, %cst_48 {dimension_numbers = #tpu.dot_dimension_numbers<[1], [0], [0], [1], [0, 0, 1, 1], [], []>} : vector<64x32xbf16>, vector<32x128xbf16>, vector<64x128xf32> -> vector<64x128xf32>
    %49 = arith.addf %42, %48 : vector<64x128xf32>
    %c0_49 = arith.constant 0 : index
    %c2_50 = arith.constant 2 : index
    %c1_51 = arith.constant 1 : index
    %c0_52 = arith.constant 0 : index
    %50 = vector.load %arg1[%c0_49, %c2_50, %c1_51, %c0_52] : memref<1x10x10x32xbf16, #tpu.memory_space<vmem>>, vector<1x8x8x32xbf16>
    %51 = vector.shape_cast %50 : vector<1x8x8x32xbf16> to vector<8x8x32xbf16>
    %52 = vector.shape_cast %51 : vector<8x8x32xbf16> to vector<64x32xbf16>
    %c7 = arith.constant 7 : index
    %c0_53 = arith.constant 0 : index
    %c0_54 = arith.constant 0 : index
    %53 = vector.load %arg2[%c7, %c0_53, %c0_54] : memref<9x32x128xbf16, #tpu.memory_space<vmem>>, vector<1x32x128xbf16>
    %54 = vector.shape_cast %53 : vector<1x32x128xbf16> to vector<32x128xbf16>
    %cst_55 = arith.constant dense<0.000000e+00> : vector<64x128xf32>
    %55 = tpu.matmul %52, %54, %cst_55 {dimension_numbers = #tpu.dot_dimension_numbers<[1], [0], [0], [1], [0, 0, 1, 1], [], []>} : vector<64x32xbf16>, vector<32x128xbf16>, vector<64x128xf32> -> vector<64x128xf32>
    %56 = arith.addf %49, %55 : vector<64x128xf32>
    %c0_56 = arith.constant 0 : index
    %c2_57 = arith.constant 2 : index
    %c2_58 = arith.constant 2 : index
    %c0_59 = arith.constant 0 : index
    %57 = vector.load %arg1[%c0_56, %c2_57, %c2_58, %c0_59] : memref<1x10x10x32xbf16, #tpu.memory_space<vmem>>, vector<1x8x8x32xbf16>
    %58 = vector.shape_cast %57 : vector<1x8x8x32xbf16> to vector<8x8x32xbf16>
    %59 = vector.shape_cast %58 : vector<8x8x32xbf16> to vector<64x32xbf16>
    %c8 = arith.constant 8 : index
    %c0_60 = arith.constant 0 : index
    %c0_61 = arith.constant 0 : index
    %60 = vector.load %arg2[%c8, %c0_60, %c0_61] : memref<9x32x128xbf16, #tpu.memory_space<vmem>>, vector<1x32x128xbf16>
    %61 = vector.shape_cast %60 : vector<1x32x128xbf16> to vector<32x128xbf16>
    %cst_62 = arith.constant dense<0.000000e+00> : vector<64x128xf32>
    %62 = tpu.matmul %59, %61, %cst_62 {dimension_numbers = #tpu.dot_dimension_numbers<[1], [0], [0], [1], [0, 0, 1, 1], [], []>} : vector<64x32xbf16>, vector<32x128xbf16>, vector<64x128xf32> -> vector<64x128xf32>
    %63 = arith.addf %56, %62 : vector<64x128xf32>
    %c0_63 = arith.constant 0 : index
    %c0_64 = arith.constant 0 : index
    %64 = vector.load %arg3[%c0_63, %c0_64] : memref<1x128xf32, #tpu.memory_space<vmem>>, vector<1x128xf32>
    %65 = vector.broadcast %64 : vector<1x128xf32> to vector<64x128xf32>
    %66 = arith.addf %63, %65 : vector<64x128xf32>
    %cst_65 = arith.constant 0.000000e+00 : f32
    %67 = vector.broadcast %cst_65 : f32 to vector<64x128xf32>
    %68 = arith.cmpf oge, %66, %67 : vector<64x128xf32>
    %cst_66 = arith.constant 1.000000e-01 : f32
    %69 = vector.broadcast %cst_66 : f32 to vector<64x128xf32>
    %70 = arith.mulf %69, %66 : vector<64x128xf32>
    %71 = arith.select %68, %66, %70 : vector<64x128xi1>, vector<64x128xf32>
    %72 = vector.shape_cast %71 : vector<64x128xf32> to vector<1x64x128xf32>
    %c0_67 = arith.constant 0 : index
    %c0_68 = arith.constant 0 : index
    %c0_69 = arith.constant 0 : index
    %73 = vector.load %arg4[%c0_67, %c0_68, %c0_69] : memref<1x64x128xf32, #tpu.memory_space<vmem>>, vector<1x64x128xf32>
    tpu.vector_store %arg4[%c0_67, %c0_68, %c0_69], %72 {strides = array<i32>} : memref<1x64x128xf32, #tpu.memory_space<vmem>>, vector<1x64x128xf32>,
    return
  }
  func.func @transform_0(%arg0: i32) -> (i32, i32, i32, i32) {
    %c0_i32 = arith.constant 0 : i32
    %c0_i32_0 = arith.constant 0 : i32
    %c0_i32_1 = arith.constant 0 : i32
    %c0_i32_2 = arith.constant 0 : i32
    return %arg0, %c0_i32, %c0_i32_0, %c0_i32_1 : i32, i32, i32, i32
  }
  func.func @transform_1(%arg0: i32) -> (i32, i32, i32) {
    %c0_i32 = arith.constant 0 : i32
    %c0_i32_0 = arith.constant 0 : i32
    %c0_i32_1 = arith.constant 0 : i32
    %c0_i32_2 = arith.constant 0 : i32
    return %c0_i32, %c0_i32_0, %c0_i32_1 : i32, i32, i32
  }
  func.func @transform_2(%arg0: i32) -> (i32, i32) {
    %c0_i32 = arith.constant 0 : i32
    %c0_i32_0 = arith.constant 0 : i32
    %c0_i32_1 = arith.constant 0 : i32
    return %c0_i32, %c0_i32_0 : i32, i32
  }
  func.func @transform_3(%arg0: i32) -> (i32, i32, i32) {
    %c0_i32 = arith.constant 0 : i32
    %c0_i32_0 = arith.constant 0 : i32
    %c0_i32_1 = arith.constant 0 : i32
    return %arg0, %c0_i32, %c0_i32_0 : i32, i32, i32
  }
}

</mosaic_0001>

<bundles_post_ra>
// kernel: inter_forward.2
= control target key start
LH: loop header
LB: loop body
LE: loop exit
PB: predicated region body
PF: predicated region fallthrough
CT: control target
= control target key end

     0   :  { %s1523_s18 = smov 0   ;;  %s1525_s19 = smov 0   ;;  %s1840_s0 = inlined_call_operand.vmem [shape: f32[2,256], index: 0, kind: input, shape index: {}]   ;;  %s1841_s1 = inlined_call_operand.vmem [shape: bf16[256,128], index: 1, kind: input, shape index: {}]   ;;  %s1842_s2 = inlined_call_operand.vmem [shape: f32[1,128], index: 2, kind: input, shape index: {}]   ;;  %s1843_s3 = inlined_call_operand.vmem [shape: bf16[128,2048], index: 3, kind: input, shape index: {}]   ;;  %s1844_s4 = inlined_call_operand.vmem [shape: f32[1,2048], index: 4, kind: input, shape index: {}]   ;;  %s1845_s5 = inlined_call_operand.vmem [shape: bf16[2,2048], index: 5, kind: output, shape index: {}]  }
   0x1   :  { %s1527_s20 = smov 0  }
   0x2 LB: > { %s1303_s21 = sadd.s32 4294967295, %s1489_s20   ;;  %s1540_s22 = sadd.s32 1, %s1489_s20   ;;  %s1489_s20 = sphi %s1527_s20, %s1848_s20   ;;  %s1485_s19 = sphi %s1525_s19, %s1847_s19   ;;  %s1481_s18 = sphi %s1523_s18, %s1846_s18  }
   0x3   : > { %s82_s23 = ssub.s32 %s1489_s20, %s1540_s22  ;;  %s85_s24 = sadd.s32 1, %s1485_s19 }
   0x4   : > { %p83_p0 = scmp.eq.s32.totalorder %s82_s23, 0  ;;  %p92_p1 = scmp.ne.s32.totalorder %s1485_s19, %s1481_s18 }
   0x5   : > { %p93_p2 = scmp.eq.s32.totalorder %s1489_s20, 0  ;;  %p1306_p4 = scmp.ge.s32.totalorder %s1489_s20, 2 }
   0x6   : > { %s1549_s25 = scalar_select %p83_p0, %s1485_s19, %s85_s24  }
   0x7   : > { %p94_p3 = por %p93_p2, %p92_p1  ;;  %179 = sbr.rel (%p1306_p4) target bundleno = 48 (0x30), region = 28 }
   0xc   : > { %182 = sbr.rel (!%p94_p3) target bundleno = 48 (0x30), region = 32  ;;  %s184_s26 = sand.u32 (%p94_p3), 1, %s1485_s19  }
   0xd   : > { %s1402_s27 = sshll.u32 (%p94_p3), %s1489_s20, 5  ;;  %s1307_s28 = sshll.u32 (%p94_p3), %s184_s26, 9 }
   0xe   : > { %s1557_s6 = scalar_lea.vmem (%p94_p3), %s1843_s3, %s1402_s27  ;;  %s1562_s7 = scalar_lea.vmem (%p94_p3), [#allocation2], %s1307_s28 }
   0xf   : > { %v202_v0 = vld [vmem:[%s1557_s6] sm:$0xff] (%p94_p3)  ;;  %v204_v1 = vld [vmem:[%s1557_s6 + $0x8] sm:$0xff] (%p94_p3)  ;;  %v206_v2 = vld [vmem:[%s1557_s6 + $0x10] sm:$0xff] (%p94_p3) }
  0x10   : > { %203 = vst [vmem:[%s1562_s7] sm:$0xff] (%p94_p3), %v202_v0  ;;  %205 = vst [vmem:[%s1562_s7 + $0x8] sm:$0xff] (%p94_p3), %v204_v1  ;;  %v208_v3 = vld [vmem:[%s1557_s6 + $0x18] sm:$0xff] (%p94_p3)  ;;  %v210_v4 = vld [vmem:[%s1557_s6 + $0x40] sm:$0xff] (%p94_p3) }
  0x11   : > { %207 = vst [vmem:[%s1562_s7 + $0x10] sm:$0xff] %v206_v2  ;;  %v212_v5 = vld [vmem:[%s1557_s6 + $0x48] sm:$0xff]  ;;  %209 = vst [vmem:[%s1562_s7 + $0x18] sm:$0xff] %v208_v3  ;;  %v214_v6 = vld [vmem:[%s1557_s6 + $0x50] sm:$0xff] }
  0x12   : > { %211 = vst [vmem:[%s1562_s7 + $0x20] sm:$0xff] %v210_v4  ;;  %213 = vst [vmem:[%s1562_s7 + $0x28] sm:$0xff] %v212_v5  ;;  %v216_v7 = vld [vmem:[%s1557_s6 + $0x58] sm:$0xff]  ;;  %v218_v8 = vld [vmem:[%s1557_s6 + $0x80] sm:$0xff] }
  0x13   : > { %215 = vst [vmem:[%s1562_s7 + $0x30] sm:$0xff] %v214_v6  ;;  %217 = vst [vmem:[%s1562_s7 + $0x38] sm:$0xff] %v216_v7  ;;  %v220_v9 = vld [vmem:[%s1557_s6 + $0x88] sm:$0xff]  ;;  %v222_v10 = vld [vmem:[%s1557_s6 + $0x90] sm:$0xff] }
  0x14   : > { %219 = vst [vmem:[%s1562_s7 + $0x40] sm:$0xff] %v218_v8  ;;  %v224_v11 = vld [vmem:[%s1557_s6 + $0x98] sm:$0xff]  ;;  %221 = vst [vmem:[%s1562_s7 + $0x48] sm:$0xff] %v220_v9  ;;  %v226_v12 = vld [vmem:[%s1557_s6 + $0xc0] sm:$0xff] }
  0x15   : > { %223 = vst [vmem:[%s1562_s7 + $0x50] sm:$0xff] %v222_v10  ;;  %225 = vst [vmem:[%s1562_s7 + $0x58] sm:$0xff] %v224_v11  ;;  %v228_v13 = vld [vmem:[%s1557_s6 + $0xc8] sm:$0xff]  ;;  %v230_v14 = vld [vmem:[%s1557_s6 + $0xd0] sm:$0xff] }
  0x16   : > { %227 = vst [vmem:[%s1562_s7 + $0x60] sm:$0xff] %v226_v12  ;;  %229 = vst [vmem:[%s1562_s7 + $0x68] sm:$0xff] %v228_v13  ;;  %v232_v15 = vld [vmem:[%s1557_s6 + $0xd8] sm:$0xff]  ;;  %v234_v16 = vld [vmem:[%s1557_s6 + $0x100] sm:$0xff] }
  0x17   : > { %231 = vst [vmem:[%s1562_s7 + $0x70] sm:$0xff] %v230_v14  ;;  %v236_v17 = vld [vmem:[%s1557_s6 + $0x108] sm:$0xff]  ;;  %233 = vst [vmem:[%s1562_s7 + $0x78] sm:$0xff] %v232_v15  ;;  %v238_v18 = vld [vmem:[%s1557_s6 + $0x110] sm:$0xff] }
  0x18   : > { %235 = vst [vmem:[%s1562_s7 + $0x80] sm:$0xff] %v234_v16  ;;  %237 = vst [vmem:[%s1562_s7 + $0x88] sm:$0xff] %v236_v17  ;;  %v240_v19 = vld [vmem:[%s1557_s6 + $0x118] sm:$0xff]  ;;  %v242_v20 = vld [vmem:[%s1557_s6 + $0x140] sm:$0xff] }
  0x19   : > { %239 = vst [vmem:[%s1562_s7 + $0x90] sm:$0xff] %v238_v18  ;;  %241 = vst [vmem:[%s1562_s7 + $0x98] sm:$0xff] %v240_v19  ;;  %v244_v21 = vld [vmem:[%s1557_s6 + $0x148] sm:$0xff]  ;;  %v246_v22 = vld [vmem:[%s1557_s6 + $0x150] sm:$0xff] }
  0x1a   : > { %243 = vst [vmem:[%s1562_s7 + $0xa0] sm:$0xff] %v242_v20  ;;  %v248_v23 = vld [vmem:[%s1557_s6 + $0x158] sm:$0xff]  ;;  %245 = vst [vmem:[%s1562_s7 + $0xa8] sm:$0xff] %v244_v21  ;;  %v250_v24 = vld [vmem:[%s1557_s6 + $0x180] sm:$0xff] }
  0x1b   : > { %247 = vst [vmem:[%s1562_s7 + $0xb0] sm:$0xff] %v246_v22  ;;  %249 = vst [vmem:[%s1562_s7 + $0xb8] sm:$0xff] %v248_v23  ;;  %v252_v25 = vld [vmem:[%s1557_s6 + $0x188] sm:$0xff]  ;;  %v254_v26 = vld [vmem:[%s1557_s6 + $0x190] sm:$0xff] }
  0x1c   : > { %251 = vst [vmem:[%s1562_s7 + $0xc0] sm:$0xff] %v250_v24  ;;  %253 = vst [vmem:[%s1562_s7 + $0xc8] sm:$0xff] %v252_v25  ;;  %v256_v27 = vld [vmem:[%s1557_s6 + $0x198] sm:$0xff]  ;;  %v258_v28 = vld [vmem:[%s1557_s6 + $0x1c0] sm:$0xff] }
  0x1d   : > { %255 = vst [vmem:[%s1562_s7 + $0xd0] sm:$0xff] %v254_v26  ;;  %v260_v29 = vld [vmem:[%s1557_s6 + $0x1c8] sm:$0xff]  ;;  %257 = vst [vmem:[%s1562_s7 + $0xd8] sm:$0xff] %v256_v27  ;;  %v262_v30 = vld [vmem:[%s1557_s6 + $0x1d0] sm:$0xff] }
  0x1e   : > { %259 = vst [vmem:[%s1562_s7 + $0xe0] sm:$0xff] %v258_v28  ;;  %261 = vst [vmem:[%s1562_s7 + $0xe8] sm:$0xff] %v260_v29  ;;  %v264_v31 = vld [vmem:[%s1557_s6 + $0x1d8] sm:$0xff]  ;;  %v266_v32 = vld [vmem:[%s1557_s6 + $0x200] sm:$0xff] }
  0x1f   : > { %263 = vst [vmem:[%s1562_s7 + $0xf0] sm:$0xff] %v262_v30  ;;  %265 = vst [vmem:[%s1562_s7 + $0xf8] sm:$0xff] %v264_v31  ;;  %v268_v33 = vld [vmem:[%s1557_s6 + $0x208] sm:$0xff]  ;;  %v270_v34 = vld [vmem:[%s1557_s6 + $0x210] sm:$0xff] }
  0x20   : > { %267 = vst [vmem:[%s1562_s7 + $0x100] sm:$0xff] %v266_v32  ;;  %v272_v35 = vld [vmem:[%s1557_s6 + $0x218] sm:$0xff]  ;;  %269 = vst [vmem:[%s1562_s7 + $0x108] sm:$0xff] %v268_v33  ;;  %v274_v36 = vld [vmem:[%s1557_s6 + $0x240] sm:$0xff] }
  0x21   : > { %271 = vst [vmem:[%s1562_s7 + $0x110] sm:$0xff] %v270_v34  ;;  %273 = vst [vmem:[%s1562_s7 + $0x118] sm:$0xff] %v272_v35  ;;  %v276_v37 = vld [vmem:[%s1557_s6 + $0x248] sm:$0xff]  ;;  %v278_v38 = vld [vmem:[%s1557_s6 + $0x250] sm:$0xff] }
  0x22   : > { %275 = vst [vmem:[%s1562_s7 + $0x120] sm:$0xff] %v274_v36  ;;  %277 = vst [vmem:[%s1562_s7 + $0x128] sm:$0xff] %v276_v37  ;;  %v280_v39 = vld [vmem:[%s1557_s6 + $0x258] sm:$0xff]  ;;  %v282_v40 = vld [vmem:[%s1557_s6 + $0x280] sm:$0xff] }
  0x23   : > { %279 = vst [vmem:[%s1562_s7 + $0x130] sm:$0xff] %v278_v38  ;;  %v284_v41 = vld [vmem:[%s1557_s6 + $0x288] sm:$0xff]  ;;  %281 = vst [vmem:[%s1562_s7 + $0x138] sm:$0xff] %v280_v39  ;;  %v286_v42 = vld [vmem:[%s1557_s6 + $0x290] sm:$0xff] }
  0x24   : > { %283 = vst [vmem:[%s1562_s7 + $0x140] sm:$0xff] %v282_v40  ;;  %285 = vst [vmem:[%s1562_s7 + $0x148] sm:$0xff] %v284_v41  ;;  %v288_v43 = vld [vmem:[%s1557_s6 + $0x298] sm:$0xff]  ;;  %v290_v44 = vld [vmem:[%s1557_s6 + $0x2c0] sm:$0xff] }
  0x25   : > { %287 = vst [vmem:[%s1562_s7 + $0x150] sm:$0xff] %v286_v42  ;;  %289 = vst [vmem:[%s1562_s7 + $0x158] sm:$0xff] %v288_v43  ;;  %v292_v45 = vld [vmem:[%s1557_s6 + $0x2c8] sm:$0xff]  ;;  %v294_v46 = vld [vmem:[%s1557_s6 + $0x2d0] sm:$0xff] }
  0x26   : > { %291 = vst [vmem:[%s1562_s7 + $0x160] sm:$0xff] %v290_v44  ;;  %v296_v47 = vld [vmem:[%s1557_s6 + $0x2d8] sm:$0xff]  ;;  %293 = vst [vmem:[%s1562_s7 + $0x168] sm:$0xff] %v292_v45  ;;  %v298_v48 = vld [vmem:[%s1557_s6 + $0x300] sm:$0xff] }
  0x27   : > { %295 = vst [vmem:[%s1562_s7 + $0x170] sm:$0xff] %v294_v46  ;;  %297 = vst [vmem:[%s1562_s7 + $0x178] sm:$0xff] %v296_v47  ;;  %v300_v49 = vld [vmem:[%s1557_s6 + $0x308] sm:$0xff]  ;;  %v302_v50 = vld [vmem:[%s1557_s6 + $0x310] sm:$0xff] }
  0x28   : > { %299 = vst [vmem:[%s1562_s7 + $0x180] sm:$0xff] %v298_v48  ;;  %301 = vst [vmem:[%s1562_s7 + $0x188] sm:$0xff] %v300_v49  ;;  %v304_v51 = vld [vmem:[%s1557_s6 + $0x318] sm:$0xff]  ;;  %v306_v52 = vld [vmem:[%s1557_s6 + $0x340] sm:$0xff] }
  0x29   : > { %303 = vst [vmem:[%s1562_s7 + $0x190] sm:$0xff] %v302_v50  ;;  %v308_v53 = vld [vmem:[%s1557_s6 + $0x348] sm:$0xff]  ;;  %305 = vst [vmem:[%s1562_s7 + $0x198] sm:$0xff] %v304_v51  ;;  %v310_v54 = vld [vmem:[%s1557_s6 + $0x350] sm:$0xff] }
  0x2a   : > { %307 = vst [vmem:[%s1562_s7 + $0x1a0] sm:$0xff] %v306_v52  ;;  %309 = vst [vmem:[%s1562_s7 + $0x1a8] sm:$0xff] %v308_v53  ;;  %v312_v55 = vld [vmem:[%s1557_s6 + $0x358] sm:$0xff]  ;;  %v314_v56 = vld [vmem:[%s1557_s6 + $0x380] sm:$0xff] }
  0x2b   : > { %311 = vst [vmem:[%s1562_s7 + $0x1b0] sm:$0xff] %v310_v54  ;;  %313 = vst [vmem:[%s1562_s7 + $0x1b8] sm:$0xff] %v312_v55  ;;  %v316_v57 = vld [vmem:[%s1557_s6 + $0x388] sm:$0xff]  ;;  %v318_v58 = vld [vmem:[%s1557_s6 + $0x390] sm:$0xff] }
  0x2c   : > { %315 = vst [vmem:[%s1562_s7 + $0x1c0] sm:$0xff] %v314_v56  ;;  %v320_v59 = vld [vmem:[%s1557_s6 + $0x398] sm:$0xff]  ;;  %317 = vst [vmem:[%s1562_s7 + $0x1c8] sm:$0xff] %v316_v57  ;;  %v322_v60 = vld [vmem:[%s1557_s6 + $0x3c0] sm:$0xff] }
  0x2d   : > { %319 = vst [vmem:[%s1562_s7 + $0x1d0] sm:$0xff] %v318_v58  ;;  %321 = vst [vmem:[%s1562_s7 + $0x1d8] sm:$0xff] %v320_v59  ;;  %v324_v61 = vld [vmem:[%s1557_s6 + $0x3c8] sm:$0xff]  ;;  %v326_v62 = vld [vmem:[%s1557_s6 + $0x3d0] sm:$0xff] }
  0x2e   : > { %323 = vst [vmem:[%s1562_s7 + $0x1e0] sm:$0xff] %v322_v60  ;;  %325 = vst [vmem:[%s1562_s7 + $0x1e8] sm:$0xff] %v324_v61  ;;  %v328_v63 = vld [vmem:[%s1557_s6 + $0x3d8] sm:$0xff] }
  0x2f   : > { %327 = vst [vmem:[%s1562_s7 + $0x1f0] sm:$0xff] %v326_v62  ;;  %329 = vst [vmem:[%s1562_s7 + $0x1f8] sm:$0xff] %v328_v63 }
  0x30 PF: > { %p1310_p5 = scmp.ge.s32.totalorder %s1489_s20, 1  ;;  %p342_p6 = scmp.lt.s32.totalorder %s1489_s20, 3 }
  0x32   : > { %p343_p7 = pnand %p1310_p5, %p342_p6 }
  0x33   : > { %s349_s26 = sand.u32 (!%p343_p7), 1, %s1481_s18   ;;  %s1312_s8 = sshll.u32 (!%p343_p7), %s1303_s21, 3 }
  0x34   : > { %346 = sbr.rel (%p343_p7) target bundleno = 531 (0x213), region = 59  ;;  %s1311_s29 = sshll.u32 (!%p343_p7), %s349_s26, 9 }
  0x35   : > { %s1728_s14 = scalar_lea.vmem (!%p343_p7), [#allocation2], %s1311_s29  ;;  %p381_p8 = scmp.lt.s32.totalorder (!%p343_p7), %s1312_s8, 15 }
  0x39   : > { %v1451_v0 = vld [vmem:[%s1841_s1 + $0x78] sm:$0xff]   ;;  %v1453_v2 = vld [vmem:[%s1841_s1 + $0x70] sm:$0xff]   ;;  %v1455_v4 = vld [vmem:[%s1841_s1 + $0x68] sm:$0xff]   ;;  %s1850_s8 = smov (!%p381_p8, %s1312_s8), 15 }
  0x3a   : > { %v1452_v1 = vld [vmem:[%s1841_s1 + $0x38] sm:$0xff]   ;;  %1403 = vmatprep.subr.bf16.mxu0 %v1451_v0  ;;  %v1454_v3 = vld [vmem:[%s1841_s1 + $0x30] sm:$0xff]   ;;  %v1456_v5 = vld [vmem:[%s1841_s1 + $0x28] sm:$0xff]   ;;  %s383_s18 = scalar_lea.vmem %s1844_s4, %s1850_s8  ;;  %s388_s11 = scalar_lea.vmem %s1845_s5, %s1850_s8 }
  0x3b   : > { %1404 = vmatpush3.bf16.msra.mxu0 %v1452_v1  ;;  %v1457_v6 = vld [vmem:[%s1841_s1 + $0x60] sm:$0xff]   ;;  %v1459_v8 = vld [vmem:[%s1841_s1 + $0x58] sm:$0xff]   ;;  %v1461_v10 = vld [vmem:[%s1841_s1 + $0x50] sm:$0xff]  }
  0x3c   : > { %1405 = vmatprep.subr.bf16.mxu0 %v1453_v2  ;;  %v1458_v7 = vld [vmem:[%s1841_s1 + $0x20] sm:$0xff]   ;;  %v1460_v9 = vld [vmem:[%s1841_s1 + $0x18] sm:$0xff]   ;;  %v1462_v19 = vld [vmem:[%s1841_s1 + $0x10] sm:$0xff]  }
  0x3d   : > { %v1314_v11 = vld.sshfl [vmem:[%s1840_s0] sm:$0x33 pattern:$0x76325410]  ;;  %v1463_v24 = vld [vmem:[%s1841_s1 + $0x48] sm:$0xff]  }
  0x3e   : > { %v637_v12 = vld [vmem:[%s1728_s14 + $0x1c0] sm:$0xff]  ;;  %v400_v14 = vcombine.high %v1314_v11, %v1314_v11  ;;  %v1464_v29 = vld [vmem:[%s1841_s1 + $0x8] sm:$0xff]   ;;  %v403_v43 = vpack.c.bf16 %v1314_v11, %v1314_v11 }
  0x3f   : > { %1406 = vmatpush3.bf16.msra.mxu0 %v1454_v3  ;;  %v641_v13 = vld [vmem:[%s1728_s14 + $0x1e0] sm:$0xff]  ;;  %v638_v32 = vld [vmem:[%s1728_s14 + $0x1c8] sm:$0xff] }
  0x40   : > { %1407 = vmatprep.subr.bf16.mxu0 %v1455_v4  ;;  %v1389_v15 = vcombine.high %v637_v12, %v641_v13  ;;  %v1388_v16 = vcombine.low %v637_v12, %v641_v13  ;;  %v629_v17 = vld [vmem:[%s1728_s14 + $0x180] sm:$0xff]  ;;  %v404_v20 = vpack.c.bf16 %v400_v14, %v400_v14  ;;  %v642_v33 = vld [vmem:[%s1728_s14 + $0x1e8] sm:$0xff] }
  0x41   : > { %v633_v18 = vld [vmem:[%s1728_s14 + $0x1a0] sm:$0xff]  ;;  %v1391_v38 = vcombine.high %v638_v32, %v642_v33  ;;  %v630_v40 = vld [vmem:[%s1728_s14 + $0x188] sm:$0xff]  ;;  %v1390_v46 = vcombine.low %v638_v32, %v642_v33  ;;  %v631_v33 = vld [vmem:[%s1728_s14 + $0x190] sm:$0xff] }
  0x42   : > { %1007 = vmatprep.subr.bf16.mxu1 %v1389_v15  ;;  %v1381_v21 = vcombine.high %v629_v17, %v633_v18  ;;  %v621_v22 = vld [vmem:[%s1728_s14 + $0x140] sm:$0xff]  ;;  %v1380_v25 = vcombine.low %v629_v17, %v633_v18  ;;  %572 = vmatprep.mubr.bf16.mxu0 %v404_v20  ;;  %v634_v41 = vld [vmem:[%s1728_s14 + $0x1a8] sm:$0xff]  ;;  %v639_v20 = vld [vmem:[%s1728_s14 + $0x1d0] sm:$0xff] }
  0x43   : > { %1408 = vmatpush3.bf16.msra.mxu0 %v1456_v5  ;;  %v625_v23 = vld [vmem:[%s1728_s14 + $0x160] sm:$0xff]  ;;  %1008 = vmatpush1.bf16.msra.mxu1 %v1388_v16  ;;  %v1383_v47 = vcombine.high %v630_v40, %v634_v41  ;;  %v622_v49 = vld [vmem:[%s1728_s14 + $0x148] sm:$0xff]  ;;  %v1382_v52 = vcombine.low %v630_v40, %v634_v41 }
  0x44   : > { %1409 = vmatprep.subr.bf16.mxu0 %v1457_v6  ;;  %1009 = vmatprep.subr.bf16.mxu1 %v1381_v21  ;;  %v1373_v26 = vcombine.high %v621_v22, %v625_v23  ;;  %v613_v27 = vld [vmem:[%s1728_s14 + $0x100] sm:$0xff]  ;;  %v1372_v31 = vcombine.low %v621_v22, %v625_v23  ;;  %v626_v50 = vld [vmem:[%s1728_s14 + $0x168] sm:$0xff]  ;;  %v643_v21 = vld [vmem:[%s1728_s14 + $0x1f0] sm:$0xff] }
  0x45   : > { %v617_v28 = vld [vmem:[%s1728_s14 + $0x120] sm:$0xff]  ;;  %v1375_v53 = vcombine.high %v622_v49, %v626_v50  ;;  %v614_v55 = vld [vmem:[%s1728_s14 + $0x108] sm:$0xff]  ;;  %v1374_v57 = vcombine.low %v622_v49, %v626_v50  ;;  %v640_v22 = vld [vmem:[%s1728_s14 + $0x1d8] sm:$0xff]  ;;  %v1393_v23 = vcombine.high %v639_v20, %v643_v21 }
  0x46   : > { %v1465_v30 = vld [vmem:[%s1841_s1 + $0x40] sm:$0xff]   ;;  %v1365_v34 = vcombine.high %v613_v27, %v617_v28  ;;  %v1364_v39 = vcombine.low %v613_v27, %v617_v28  ;;  %v618_v56 = vld [vmem:[%s1728_s14 + $0x128] sm:$0xff]  ;;  %v1491_v28 = vmov 0  }
  0x47   : > { %1410 = vmatpush3.bf16.msra.mxu0 %v1458_v7  ;;  %1010 = vmatpush1.bf16.msra.mxu1 %v1380_v25  ;;  %v605_v35 = vld [vmem:[%s1728_s14 + $0xc0] sm:$0xff]  ;;  %v1367_v58 = vcombine.high %v614_v55, %v618_v56  ;;  %v606_v59 = vld [vmem:[%s1728_s14 + $0xc8] sm:$0xff]  ;;  %v1366_v61 = vcombine.low %v614_v55, %v618_v56  ;;  %v1392_v25 = vcombine.low %v639_v20, %v643_v21  ;;  %v587_v20 = vld [vmem:[%s1728_s14 + $0x30] sm:$0xff] }
  0x48   : > { %1411 = vmatprep.subr.bf16.mxu0 %v1459_v8  ;;  %1011 = vmatprep.subr.bf16.mxu1 %v1373_v26  ;;  %v609_v36 = vld [vmem:[%s1728_s14 + $0xe0] sm:$0xff]  ;;  %v610_v60 = vld [vmem:[%s1728_s14 + $0xe8] sm:$0xff]  ;;  %v584_v21 = vld [vmem:[%s1728_s14 + $0x18] sm:$0xff] }
  0x49   : > { %v1466_v37 = vld [vmem:[%s1841_s1] sm:$0xff]   ;;  %v1357_v42 = vcombine.high %v605_v35, %v609_v36  ;;  %v1356_v48 = vcombine.low %v605_v35, %v609_v36  ;;  %v1359_v62 = vcombine.high %v606_v59, %v610_v60  ;;  %v598_v63 = vld [vmem:[%s1728_s14 + $0x88] sm:$0xff]  ;;  %v1358_v1 = vcombine.low %v606_v59, %v610_v60  ;;  %1039 = vmatprep.mubr.bf16.mxu1 %v1491_v28  ;;  %v635_v35 = vld [vmem:[%s1728_s14 + $0x1b0] sm:$0xff] }
  0x4a   : > { %v597_v44 = vld [vmem:[%s1728_s14 + $0x80] sm:$0xff]  ;;  %v602_v0 = vld [vmem:[%s1728_s14 + $0xa8] sm:$0xff]  ;;  %v632_v36 = vld [vmem:[%s1728_s14 + $0x198] sm:$0xff]  ;;  %v1385_v41 = vcombine.high %v631_v33, %v635_v35 }
  0x4b   : > { %1412 = vmatpush3.bf16.msra.mxu0 %v1460_v9  ;;  %1012 = vmatpush1.bf16.msra.mxu1 %v1372_v31  ;;  %v601_v45 = vld [vmem:[%s1728_s14 + $0xa0] sm:$0xff]  ;;  %v1351_v2 = vcombine.high %v598_v63, %v602_v0  ;;  %v1350_v3 = vcombine.low %v598_v63, %v602_v0  ;;  %v590_v6 = vld [vmem:[%s1728_s14 + $0x48] sm:$0xff]  ;;  %v607_v59 = vld [vmem:[%s1728_s14 + $0xd0] sm:$0xff] }
  0x4c   : > { %1413 = vmatprep.subr.bf16.mxu0 %v1461_v10  ;;  %1013 = vmatprep.subr.bf16.mxu1 %v1365_v34  ;;  %v1349_v51 = vcombine.high %v597_v44, %v601_v45  ;;  %v1348_v54 = vcombine.low %v597_v44, %v601_v45  ;;  %v589_v4 = vld [vmem:[%s1728_s14 + $0x40] sm:$0xff]  ;;  %v594_v8 = vld [vmem:[%s1728_s14 + $0x68] sm:$0xff]  ;;  %v627_v44 = vld [vmem:[%s1728_s14 + $0x170] sm:$0xff] }
  0x4d   : > { %v593_v5 = vld [vmem:[%s1728_s14 + $0x60] sm:$0xff]  ;;  %v1342_v9 = vcombine.low %v590_v6, %v594_v8  ;;  %v1343_v10 = vcombine.high %v590_v6, %v594_v8  ;;  %v582_v14 = vld [vmem:[%s1728_s14 + $0x8] sm:$0xff]  ;;  %v624_v45 = vld [vmem:[%s1728_s14 + $0x158] sm:$0xff] }
  0x4e   : > { %v1341_v7 = vcombine.high %v589_v4, %v593_v5  ;;  %v1340_v11 = vcombine.low %v589_v4, %v593_v5  ;;  %v581_v12 = vld [vmem:[%s1728_s14] sm:$0xff]  ;;  %v586_v16 = vld [vmem:[%s1728_s14 + $0x28] sm:$0xff]  ;;  %v611_v60 = vld [vmem:[%s1728_s14 + $0xf0] sm:$0xff] }
  0x4f   : > { %1414 = vmatpush3.bf16.msra.mxu0 %v1462_v19  ;;  %1014 = vmatpush1.bf16.msra.mxu1 %v1364_v39  ;;  %v585_v13 = vld [vmem:[%s1728_s14 + $0x20] sm:$0xff]  ;;  %v1334_v17 = vcombine.low %v582_v14, %v586_v16  ;;  %v1335_v18 = vcombine.high %v582_v14, %v586_v16  ;;  %v603_v4 = vld [vmem:[%s1728_s14 + $0xb0] sm:$0xff]  ;;  %v600_v5 = vld [vmem:[%s1728_s14 + $0x98] sm:$0xff] }
  0x50   : > { %1415 = vmatprep.subr.bf16.mxu0 %v1463_v24  ;;  %1015 = vmatprep.subr.bf16.mxu1 %v1357_v42  ;;  %v1333_v15 = vcombine.high %v581_v12, %v585_v13  ;;  %v1332_v19 = vcombine.low %v581_v12, %v585_v13  ;;  %v644_v24 = vld [vmem:[%s1728_s14 + $0x1f8] sm:$0xff]  ;;  %v595_v12 = vld [vmem:[%s1728_s14 + $0x70] sm:$0xff] }
  0x51   : > { %v1394_v26 = vcombine.low %v640_v22, %v644_v24  ;;  %v1395_v27 = vcombine.high %v640_v22, %v644_v24  ;;  %v604_v6 = vld [vmem:[%s1728_s14 + $0xb8] sm:$0xff] }
  0x52   : > { %v592_v13 = vld [vmem:[%s1728_s14 + $0x58] sm:$0xff]  ;;  %v1354_v16 = vcombine.low %v600_v5, %v604_v6 }
  0x53   : > { %1416 = vmatpush3.bf16.msra.mxu0 %v1464_v29  ;;  %1016 = vmatpush1.bf16.msra.mxu1 %v1356_v48  ;;  %v596_v14 = vld [vmem:[%s1728_s14 + $0x78] sm:$0xff] }
  0x54   : > { %1417 = vmatprep.subr.bf16.mxu0 %v1465_v30  ;;  %1017 = vmatprep.subr.bf16.mxu1 %v1349_v51  ;;  %v1315_v30 = vld [vmem:[%s1842_s2] ss:$0 sm:$0xff]  ;;  %v615_v51 = vld [vmem:[%s1728_s14 + $0x110] sm:$0xff]  ;;  %v588_v22 = vld [vmem:[%s1728_s14 + $0x38] sm:$0xff]  ;;  %v1346_v24 = vcombine.low %v592_v13, %v596_v14 }
  0x57   : > { %1418 = vmatpush3.bf16.msra.mxu0 %v1466_v37  ;;  %1018 = vmatpush1.bf16.msra.mxu1 %v1348_v54  ;;  %v636_v37 = vld [vmem:[%s1728_s14 + $0x1b8] sm:$0xff] }
  0x58   : > { %1048 = vmatprep.subr.bf16.mxu0 %v1391_v38  ;;  %1019 = vmatprep.subr.bf16.mxu1 %v1341_v7  ;;  %v1387_v42 = vcombine.high %v632_v36, %v636_v37  ;;  %v1386_v48 = vcombine.low %v632_v36, %v636_v37  ;;  %v620_v54 = vld [vmem:[%s1728_s14 + $0x138] sm:$0xff]  ;;  %v1360_v7 = vcombine.low %v607_v59, %v611_v60  ;;  %v647_v37 = vlaneseq }
  0x5a   : > { %573 = vmatmul.mubr.bf16.vlgmr.msra.gmra.mxu0 %v403_v43  ;;  %v623_v43 = vld [vmem:[%s1728_s14 + $0x150] sm:$0xff] }
  0x5b   : > { %1049 = vmatpush1.bf16.msra.mxu0 %v1390_v46  ;;  %1020 = vmatpush1.bf16.msra.mxu1 %v1340_v11  ;;  %v628_v46 = vld [vmem:[%s1728_s14 + $0x178] sm:$0xff]  ;;  %v1377_v49 = vcombine.high %v623_v43, %v627_v44  ;;  %v1376_v55 = vcombine.low %v623_v43, %v627_v44  ;;  %v591_v11 = vld [vmem:[%s1728_s14 + $0x50] sm:$0xff]  ;;  %v645_v43 = vld [vmem:[%s383_s18] sm:$0xff] }
  0x5c   : > { %1050 = vmatprep.subr.bf16.mxu0 %v1383_v47  ;;  %1021 = vmatprep.subr.bf16.mxu1 %v1333_v15  ;;  %v1384_v47 = vcombine.low %v631_v33, %v635_v35  ;;  %v1379_v50 = vcombine.high %v624_v45, %v628_v46  ;;  %v1378_v56 = vcombine.low %v624_v45, %v628_v46  ;;  %v1492_v45 = vmov 1966171168  }
  0x5d   : > { %1080 = vmatprep.mubr.bf16.mxu0 %v1491_v28  ;;  %v1192_v46 = vunpack.c.l.s4 %v1492_v45 }
  0x5f   : > { %1051 = vmatpush1.bf16.msra.mxu0 %v1382_v52  ;;  %1022 = vmatpush1.bf16.msra.mxu1 %v1332_v19  ;;  %v619_v52 = vld [vmem:[%s1728_s14 + $0x130] sm:$0xff] }
  0x60   : > { %1052 = vmatprep.subr.bf16.mxu0 %v1375_v53  ;;  %1089 = vmatprep.subr.bf16.mxu1 %v1393_v23  ;;  %v616_v53 = vld [vmem:[%s1728_s14 + $0x118] sm:$0xff]  ;;  %v1368_v63 = vcombine.low %v615_v51, %v619_v52  ;;  %v583_v19 = vld [vmem:[%s1728_s14 + $0x10] sm:$0xff]  ;;  %v1344_v23 = vcombine.low %v591_v11, %v595_v12 }
  0x61   : > { %v1370_v0 = vcombine.low %v616_v53, %v620_v54 }
  0x63   : > { %1053 = vmatpush1.bf16.msra.mxu0 %v1374_v57  ;;  %v1369_v57 = vcombine.high %v615_v51, %v619_v52  ;;  %v1193_v51 = vunpack.c.0.s8 %v1192_v46 }
  0x64   : > { %1054 = vmatprep.subr.bf16.mxu0 %v1367_v58  ;;  %v1371_v58 = vcombine.high %v616_v53, %v620_v54 }
  0x67   : > { %1055 = vmatpush1.bf16.msra.mxu0 %v1366_v61  ;;  %v608_v61 = vld [vmem:[%s1728_s14 + $0xd8] sm:$0xff] }
  0x68   : > { %1056 = vmatprep.subr.bf16.mxu0 %v1359_v62  ;;  %v612_v62 = vld [vmem:[%s1728_s14 + $0xf8] sm:$0xff] }
  0x69   : > { %v1362_v8 = vcombine.low %v608_v61, %v612_v62 }
  0x6b   : > { %1057 = vmatpush1.bf16.msra.mxu0 %v1358_v1  ;;  %v1361_v1 = vcombine.high %v607_v59, %v611_v60 }
  0x6c   : > { %1058 = vmatprep.subr.bf16.mxu0 %v1351_v2  ;;  %v1363_v2 = vcombine.high %v608_v61, %v612_v62 }
  0x6f   : > { %1059 = vmatpush1.bf16.msra.mxu0 %v1350_v3  ;;  %v599_v3 = vld [vmem:[%s1728_s14 + $0x90] sm:$0xff] }
  0x70   : > { %1060 = vmatprep.subr.bf16.mxu0 %v1343_v10  ;;  %v1355_v10 = vcombine.high %v600_v5, %v604_v6  ;;  %v1352_v15 = vcombine.low %v599_v3, %v603_v4 }
  0x73   : > { %1061 = vmatpush1.bf16.msra.mxu0 %v1342_v9  ;;  %v1353_v9 = vcombine.high %v599_v3, %v603_v4 }
  0x74   : > { %1062 = vmatprep.subr.bf16.mxu0 %v1335_v18  ;;  %v1347_v18 = vcombine.high %v592_v13, %v596_v14 }
  0x77   : > { %1063 = vmatpush1.bf16.msra.mxu0 %v1334_v17  ;;  %v1345_v17 = vcombine.high %v591_v11, %v595_v12 }
  0x78   : > { %1130 = vmatprep.subr.bf16.mxu0 %v1395_v27  ;;  %v1336_v27 = vcombine.low %v583_v19, %v587_v20 }
 0x11a   : > { %v1419_v29 = vpop.f32.mrf.mxu0 }
 0x11c   : > { %v1420_v31 = vpop.f32.mrf.mxu0 }
 0x11d   : > { %v1421_v32 = vadd.f32 %v1420_v31, %v1419_v29 }
 0x11e   : > { %v1422_v34 = vpop.f32.mrf.mxu0 }
 0x11f   : > { %v575_v38 = vadd.f32 %v1421_v32, %v1315_v30 }
 0x120   : > { %v1423_v39 = vpop.f32.mrf.mxu0 }
 0x121   : > { %v1788_v40 = vpack.c.bf16 %v575_v38, %v575_v38  ;;  %v648_v38 = vshrl.u32 %v647_v37, 7 }
 0x123   : > { %1040 = vmatmul.mubr.bf16.vlgmr.msra.gmra.mxu1 %v1788_v40  ;;  %1081 = vmatmul.mubr.bf16.vlgmr.msra.gmra.mxu0 %v1788_v40  ;;  %v653_v39 = vsub.s32 1, %v648_v38  ;;  %v665_v53 = vsub.s32 4, %v648_v38  ;;  %v673_v54 = vsub.s32 6, %v648_v38  ;;  %v1196_v60 = vsub.s32 %v1193_v51, %v648_v38 }
 0x124   : > { %1090 = vmatpush1.bf16.msra.mxu1 %v1392_v25  ;;  %1131 = vmatpush1.bf16.msra.mxu0 %v1394_v26  ;;  %v1337_v25 = vcombine.high %v583_v19, %v587_v20  ;;  %v1339_v26 = vcombine.high %v584_v21, %v588_v22 }
 0x125   : > { %1091 = vmatprep.subr.bf16.mxu1 %v1385_v41  ;;  %1132 = vmatprep.subr.bf16.mxu0 %v1387_v42  ;;  %v649_v41 = vsub.s32 0, %v648_v38  ;;  %v657_v42 = vsub.s32 2, %v648_v38  ;;  %v654_v44 = vrot.slane %v645_v43, %v653_v39  ;;  %v666_v62 = vrot.slane %v645_v43, %v665_v53 }
 0x126   : > { %1121 = vmatprep.mubr.bf16.mxu1 %v1491_v28  ;;  %1162 = vmatprep.mubr.bf16.mxu0 %v1491_v28  ;;  %v1338_v28 = vcombine.low %v584_v21, %v588_v22 }
 0x128   : > { %1092 = vmatpush1.bf16.msra.mxu1 %v1384_v47  ;;  %1133 = vmatpush1.bf16.msra.mxu0 %v1386_v48  ;;  %v650_v48 = vrot.slane %v645_v43, %v649_v41 }
 0x129   : > { %1093 = vmatprep.subr.bf16.mxu1 %v1377_v49  ;;  %1134 = vmatprep.subr.bf16.mxu0 %v1379_v50  ;;  %v658_v49 = vrot.slane %v645_v43, %v657_v42 }
 0x12c   : > { %1094 = vmatpush1.bf16.msra.mxu1 %v1376_v55  ;;  %1135 = vmatpush1.bf16.msra.mxu0 %v1378_v56  ;;  %v669_v55 = vsub.s32 5, %v648_v38  ;;  %v677_v56 = vsub.s32 7, %v648_v38 }
 0x12d   : > { %1095 = vmatprep.subr.bf16.mxu1 %v1369_v57  ;;  %1136 = vmatprep.subr.bf16.mxu0 %v1371_v58 }
 0x130   : > { %1096 = vmatpush1.bf16.msra.mxu1 %v1368_v63  ;;  %1137 = vmatpush1.bf16.msra.mxu0 %v1370_v0  ;;  %v674_v63 = vrot.slane %v645_v43, %v673_v54  ;;  %v670_v0 = vrot.slane %v645_v43, %v669_v55 }
 0x131   : > { %1097 = vmatprep.subr.bf16.mxu1 %v1361_v1  ;;  %1138 = vmatprep.subr.bf16.mxu0 %v1363_v2  ;;  %v678_v1 = vrot.slane %v645_v43, %v677_v56 }
 0x134   : > { %1098 = vmatpush1.bf16.msra.mxu1 %v1360_v7  ;;  %1139 = vmatpush1.bf16.msra.mxu0 %v1362_v8 }
 0x135   : > { %1099 = vmatprep.subr.bf16.mxu1 %v1353_v9  ;;  %1140 = vmatprep.subr.bf16.mxu0 %v1355_v10 }
 0x138   : > { %1100 = vmatpush1.bf16.msra.mxu1 %v1352_v15  ;;  %1141 = vmatpush1.bf16.msra.mxu0 %v1354_v16 }
 0x139   : > { %1101 = vmatprep.subr.bf16.mxu1 %v1345_v17  ;;  %1142 = vmatprep.subr.bf16.mxu0 %v1347_v18 }
 0x13c   : > { %1102 = vmatpush1.bf16.msra.mxu1 %v1344_v23  ;;  %1143 = vmatpush1.bf16.msra.mxu0 %v1346_v24 }
 0x13d   : > { %1103 = vmatprep.subr.bf16.mxu1 %v1337_v25  ;;  %1144 = vmatprep.subr.bf16.mxu0 %v1339_v26 }
 0x140   : > { %1104 = vmatpush1.bf16.msra.mxu1 %v1336_v27  ;;  %1145 = vmatpush1.bf16.msra.mxu0 %v1338_v28 }
 0x143   : > { %1122 = vmatmul.mubr.bf16.vlgmr.msra.gmra.mxu1 %v1788_v40  ;;  %1163 = vmatmul.mubr.bf16.vlgmr.msra.gmra.mxu0 %v1788_v40  ;;  %v661_v40 = vsub.s32 3, %v648_v38 }
 0x145   : > { %v662_v47 = vrot.slane %v645_v43, %v661_v40 }
 0x1e3   : > { %v1041_v29 = vpop.f32.mrf.mxu1  ;;  %v1082_v30 = vpop.f32.mrf.mxu0 }
 0x1e4   : > { %v1042_v57 = vadd.f32 %v1041_v29, %v650_v48  ;;  %v1083_v58 = vadd.f32 %v1082_v30, %v658_v49 }
 0x1e5   : > { %v1043_v31 = vpop.f32.mrf.mxu1  ;;  %v1084_v32 = vpop.f32.mrf.mxu0 }
 0x1e6   : > { %v1044_v50 = vadd.f32 %v1043_v31, %v654_v44  ;;  %v1085_v52 = vadd.f32 %v1084_v32, %v662_v47 }
 0x1e7   : > { %v1045_v33 = vpop.f32.mrf.mxu1  ;;  %v1086_v34 = vpop.f32.mrf.mxu0 }
 0x1e8   : > { %v1396_v59 = vpack.c.bf16 %v1044_v50, %v1042_v57  ;;  %v1397_v61 = vpack.c.bf16 %v1085_v52, %v1083_v58 }
 0x1e9   : > { %v1046_v35 = vpop.f32.mrf.mxu1  ;;  %v1087_v36 = vpop.f32.mrf.mxu0 }
 0x1ea   : > { %v1197_v4 = vrot.slane %v1396_v59, %v1196_v60  ;;  %v1204_v5 = vrot.slane %v1397_v61, %v1196_v60 }
 0x1ec   : > { %v1219_v18 = vcombine.low %v1197_v4, %v1204_v5 }
 0x1ee   : > { %v1227_v22 = vrot.slane %v1219_v18, %v1196_v60 }
 0x203   : > { %v1123_v2 = vpop.f32.mrf.mxu1  ;;  %v1164_v3 = vpop.f32.mrf.mxu0 }
 0x204   : > { %v1124_v8 = vadd.f32 %v1123_v2, %v666_v62  ;;  %v1165_v9 = vadd.f32 %v1164_v3, %v674_v63 }
 0x205   : > { %v1125_v6 = vpop.f32.mrf.mxu1  ;;  %v1166_v7 = vpop.f32.mrf.mxu0 }
 0x206   : > { %v1126_v10 = vadd.f32 %v1125_v6, %v670_v0  ;;  %v1167_v11 = vadd.f32 %v1166_v7, %v678_v1 }
 0x207   : > { %v1127_v12 = vpop.f32.mrf.mxu1  ;;  %v1168_v13 = vpop.f32.mrf.mxu0 }
 0x208   : > { %v1398_v14 = vpack.c.bf16 %v1126_v10, %v1124_v8  ;;  %v1399_v15 = vpack.c.bf16 %v1167_v11, %v1165_v9 }
 0x209   : > { %v1128_v16 = vpop.f32.mrf.mxu1  ;;  %v1169_v17 = vpop.f32.mrf.mxu0 }
 0x20a   : > { %v1211_v19 = vrot.slane %v1398_v14, %v1196_v60  ;;  %v1218_v20 = vrot.slane %v1399_v15, %v1196_v60 }
 0x20c   : > { %v1220_v21 = vcombine.low %v1211_v19, %v1218_v20 }
 0x20e   : > { %v1234_v23 = vrot.slane %v1220_v21, %v1196_v60 }
 0x210   : > { %v1235_v24 = vcombine.low %v1227_v22, %v1234_v23 }
 0x212   : > { %1237 = vst [vmem:[%s388_s11] sm:$0xff] %v1235_v24 }
 0x213 PF: > { %p12_p9 = scmp.ge.s32.totalorder %s1540_s22, 4   ;;  %s1846_s18 = smov %s1485_s19 }
 0x214   : > { %s1847_s19 = smov %s1549_s25  ;;  %s1848_s20 = smov %s1540_s22 }
 0x215   :  { %14 = sbr.rel (!%p12_p9) target bundleno = 2 (0x2), region = 101 }

// kernel: inter_forward.3
= control target key start
LH: loop header
LB: loop body
LE: loop exit
PB: predicated region body
PF: predicated region fallthrough
CT: control target
= control target key end

     0   :  { %s2339_s12 = smov 0   ;;  %s2856_s0 = inlined_call_operand.vmem [shape: bf16[2,10,10,32], index: 0, kind: input, shape index: {}]   ;;  %s2857_s1 = inlined_call_operand.vmem [shape: bf16[9,32,128], index: 1, kind: input, shape index: {}]   ;;  %s2858_s2 = inlined_call_operand.vmem [shape: f32[1,128], index: 2, kind: input, shape index: {}]   ;;  %s2859_s3 = inlined_call_operand.vmem [shape: f32[2,64,128], index: 3, kind: output, shape index: {}]  }
   0x1 LB: > { %s1884_s13 = sadd.s32 4294967295, %s2317_s12   ;;  %p1888_p0 = scmp.ge.s32.totalorder %s2317_s12, 1  ;;  %s2317_s12 = sphi %s2339_s12, %s13_s12  }
   0x2   : > { %p137_p1 = scmp.lt.s32.totalorder %s2317_s12, 3 }
   0x4   : > { %p138_p2 = pnand %p1888_p0, %p137_p1 }
   0x5   : > { %p161_p3 = scmp.lt.s32.totalorder (!%p138_p2), %s1884_s13, 1 }
   0x6   : > { %141 = sbr.rel (%p138_p2) target bundleno = 316 (0x13c), region = 32 }
   0xb   : > { %v2281_v0 = vld [vmem:[%s2857_s1 + $0x18] sm:$0xff]   ;;  %v2282_v1 = vld [vmem:[%s2857_s1 + $0x10] sm:$0xff]   ;;  %s2865_s13 = smov (!%p161_p3, %s1884_s13), 1  ;;  %v2358_v2 = vld [vmem:[%s2857_s1 + $0x8] sm:$0xff]   ;;  %vm192_vm0 = vsmask.f32 3328 }
   0xc   : > { %2268 = vmatprep.subr.bf16.mxu1 %v2281_v0  ;;  %2160 = vmatprep.subr.bf16.mxu0 %v2281_v0  ;;  %s2272_s20 = smul.u32 80, %s2865_s13  ;;  %v2364_v3 = vld [vmem:[%s2857_s1 + $0x28] sm:$0xff]   ;;  %vm193_vm1 = vsmask.f32 7440  ;;  %vm336_vm2 = vcmask 261120   ;;  %vm547_vm4 = vcmask 1042432  }
   0xd   : > { %2270 = vmatpush3.bf16.msra.mxu1 %v2281_v0  ;;  %2161 = vmatpush3.bf16.msra.mxu0 %v2281_v0  ;;  %vm2410_vm3 = vmor %vm192_vm0, %vm193_vm1  ;;  %vm548_vm5 = vcmask 1046532   ;;  %s2105_s4 = sshll.u32 %s2865_s13, 6 }
   0xe   : > { %2269 = vmatprep.subr.bf16.mxu1 %v2282_v1  ;;  %2162 = vmatprep.subr.bf16.mxu0 %v2282_v1  ;;  %s2369_s25 = scalar_lea.vmem %s2856_s0, %s2272_s20  ;;  %vm2474_vm6 = vmor %vm547_vm4, %vm548_vm5  ;;  %s2831_s7 = scalar_lea.vmem %s2859_s3, %s2105_s4 }
   0xf   : > { %v2372_v4 = vld [vmem:[%s2369_s25] sm:$0xf]  ;;  %v2375_v5 = vld [vmem:[%s2369_s25 + $0x8] sm:$0xf]  ;;  %v2378_v6 = vld [vmem:[%s2369_s25 + $0x4] sm:$0x1] }
  0x10   : > { %v2381_v7 = vld [vmem:[%s2369_s25 + $0xc] sm:$0x1]  ;;  %v196_v8 = vshrl.u32 %v2372_v4, 16  ;;  %v199_v9 = vshll.u32 %v2372_v4, 16  ;;  %v205_v10 = vshll.u32 %v2378_v6, 16  ;;  %v210_v11 = vshrl.u32 %v2375_v5, 16 }
  0x11   : > { %2271 = vmatpush3.bf16.msra.mxu1 %v2282_v1  ;;  %2163 = vmatpush3.bf16.msra.mxu0 %v2282_v1  ;;  %v213_v12 = vshll.u32 %v2375_v5, 16  ;;  %v219_v13 = vshll.u32 %v2381_v7, 16  ;;  %v552_v14 = vrot.slane %v2378_v6, 5  ;;  %v556_v15 = vrot.slane %v2381_v7, 5  ;;  %v2394_v16 = vld [vmem:[%s2369_s25 + $0x20] sm:$0xf] }
  0x12   : > { %2172 = vmatprep.subr.bf16.mxu1 %v2358_v2  ;;  %2184 = vmatprep.subr.bf16.mxu0 %v2364_v3  ;;  %v198_v17 = vrot.slane %v196_v8, 4  ;;  %v201_v18 = vrot.slane %v199_v9, 5  ;;  %v207_v19 = vrot.slane %v205_v10, 5  ;;  %v212_v20 = vrot.slane %v210_v11, 4  ;;  %v2397_v21 = vld [vmem:[%s2369_s25 + $0x28] sm:$0xf] }
  0x13   : > { %v215_v22 = vrot.slane %v213_v12, 5  ;;  %v221_v23 = vrot.slane %v219_v13, 5  ;;  %v2400_v24 = vld [vmem:[%s2369_s25 + $0x24] sm:$0x1]  ;;  %v2403_v25 = vld [vmem:[%s2369_s25 + $0x2c] sm:$0x1] }
  0x14   : > { %v202_v26 = vor.u32 %v201_v18, %v198_v17  ;;  %v252_v27 = vshrl.u32 %v2394_v16, 16  ;;  %v255_v28 = vshll.u32 %v2394_v16, 16  ;;  %v261_v29 = vshll.u32 %v2400_v24, 16  ;;  %v2418_v35 = vld [vmem:[%s2369_s25 + $0x10] sm:$0xf]  ;;  %v2285_v7 = vld [vmem:[%s2857_s1] sm:$0xff]  }
  0x15   : > { %v216_v31 = vor.u32 %v215_v22, %v212_v20  ;;  %v266_v32 = vshrl.u32 %v2397_v21, 16  ;;  %v269_v33 = vshll.u32 %v2397_v21, 16  ;;  %v275_v34 = vshll.u32 %v2403_v25, 16  ;;  %v2421_v40 = vld [vmem:[%s2369_s25 + $0x18] sm:$0xf] }
  0x16   : > { %v203_v36 = vrot.slane %v202_v26, 4  ;;  %v254_v37 = vrot.slane %v252_v27, 4  ;;  %v257_v38 = vrot.slane %v255_v28, 5  ;;  %v263_v39 = vrot.slane %v261_v29, 5  ;;  %v2424_v45 = vld [vmem:[%s2369_s25 + $0x14] sm:$0x1] }
  0x17   : > { %v217_v41 = vrot.slane %v216_v31, 4  ;;  %v268_v42 = vrot.slane %v266_v32, 4  ;;  %v271_v43 = vrot.slane %v269_v33, 5  ;;  %v277_v44 = vrot.slane %v275_v34, 5  ;;  %v2433_v52 = vld [vmem:[%s2369_s25 + $0x1c] sm:$0x1] }
  0x18   : > { %v208_v46 = vsel %vm2410_vm3, %v203_v36, %v207_v19  ;;  %v258_v47 = vor.u32 %v257_v38, %v254_v37  ;;  %v568_v48 = vrot.slane %v2400_v24, 5  ;;  %v572_v49 = vrot.slane %v2403_v25, 5  ;;  %v2438_v55 = vld [vmem:[%s2369_s25 + $0x30] sm:$0xf]  ;;  %v2443_v60 = vld [vmem:[%s2369_s25 + $0x34] sm:$0x1] }
  0x19   : > { %v222_v50 = vsel %vm2410_vm3, %v217_v41, %v221_v23  ;;  %v272_v51 = vor.u32 %v271_v43, %v268_v42  ;;  %v224_v53 = vshrl.u32 %v2418_v35, 16  ;;  %v227_v54 = vshll.u32 %v2418_v35, 16  ;;  %v2447_v1 = vld [vmem:[%s2369_s25 + $0x38] sm:$0xf]  ;;  %v2450_v8 = vld [vmem:[%s2369_s25 + $0x3c] sm:$0x1] }
  0x1a   : > { %v1896_v56 = vcombine.low %v208_v46, %v222_v50  ;;  %v259_v57 = vrot.slane %v258_v47, 4  ;;  %v233_v58 = vshll.u32 %v2424_v45, 16  ;;  %v238_v59 = vshrl.u32 %v2421_v40, 16  ;;  %v523_v20 = vld [vmem:[%s2369_s25] sm:$0xe] }
  0x1b   : > { %v273_v61 = vrot.slane %v272_v51, 4  ;;  %v226_v62 = vrot.slane %v224_v53, 4  ;;  %v229_v63 = vrot.slane %v227_v54, 5  ;;  %v241_v0 = vshll.u32 %v2421_v40, 16  ;;  %v524_v28 = vld [vmem:[%s2369_s25 + $0x8] sm:$0xe] }
  0x1c   : > { %2164 = vmatprep.mubr.msk.bf16.mxu0 %vm336_vm2, %v1896_v56  ;;  %v264_v9 = vsel %vm2410_vm3, %v259_v57, %v263_v39  ;;  %v235_v10 = vrot.slane %v233_v58, 5  ;;  %v240_v11 = vrot.slane %v238_v59, 4  ;;  %v247_v12 = vshll.u32 %v2433_v52, 16  ;;  %v525_v34 = vld [vmem:[%s2369_s25 + $0x10] sm:$0xe] }
  0x1d   : > { %v278_v13 = vsel %vm2410_vm3, %v273_v61, %v277_v44  ;;  %v230_v17 = vor.u32 %v229_v63, %v226_v62  ;;  %v243_v18 = vrot.slane %v241_v0, 5  ;;  %v560_v19 = vrot.slane %v2424_v45, 5  ;;  %v526_v45 = vld [vmem:[%s2369_s25 + $0x18] sm:$0xe]  ;;  %v527_v46 = vld [vmem:[%s2369_s25 + $0x20] sm:$0xe] }
  0x1e   : > { %v1898_v22 = vcombine.low %v264_v9, %v278_v13  ;;  %v249_v23 = vrot.slane %v247_v12, 5  ;;  %v564_v26 = vrot.slane %v2433_v52, 5  ;;  %v280_v27 = vshrl.u32 %v2438_v55, 16  ;;  %v528_v53 = vld [vmem:[%s2369_s25 + $0x28] sm:$0xe]  ;;  %v2286_v62 = vld [vmem:[%s2857_s1 + $0x20] sm:$0xff]  }
  0x1f   : > { %v231_v29 = vrot.slane %v230_v17, 4  ;;  %v244_v31 = vor.u32 %v243_v18, %v240_v11  ;;  %v283_v32 = vshll.u32 %v2438_v55, 16  ;;  %v289_v33 = vshll.u32 %v2443_v60, 16  ;;  %v529_v9 = vld [vmem:[%s2369_s25 + $0x30] sm:$0xe] }
  0x20   : > { %2168 = vmatprep.mubr.msk.bf16.mxu1 %vm336_vm2, %v1898_v22  ;;  %v282_v36 = vrot.slane %v280_v27, 4  ;;  %v294_v37 = vshrl.u32 %v2447_v1, 16  ;;  %v297_v38 = vshll.u32 %v2447_v1, 16  ;;  %v303_v39 = vshll.u32 %v2450_v8, 16  ;;  %v1960_v27 = vld [vmem:[%s2369_s25 + $0x8] sm:$0xf] }
  0x21   : > { %v236_v41 = vsel %vm2410_vm3, %v231_v29, %v235_v10  ;;  %v245_v42 = vrot.slane %v244_v31, 4  ;;  %v285_v43 = vrot.slane %v283_v32, 5  ;;  %v291_v47 = vrot.slane %v289_v33, 5  ;;  %v530_v10 = vld [vmem:[%s2369_s25 + $0x38] sm:$0xe] }
  0x22   : > { %v296_v50 = vrot.slane %v294_v37, 4  ;;  %v299_v51 = vrot.slane %v297_v38, 5  ;;  %v1916_v52 = vrot.slane %v523_v20, 9  ;;  %v305_v57 = vrot.slane %v303_v39, 5  ;;  %v1962_v29 = vld [vmem:[%s2369_s25 + $0x10] sm:$0xf] }
  0x23   : > { %v250_v54 = vsel %vm2410_vm3, %v245_v42, %v249_v23  ;;  %v286_v56 = vor.u32 %v285_v43, %v282_v36  ;;  %v1917_v58 = vrot.slane %v524_v28, 9  ;;  %v1918_v0 = vrot.slane %v525_v34, 9  ;;  %v2525_v28 = vld [vmem:[%s2369_s25 + $0xc] sm:$0x1]  ;;  %v2530_v36 = vld [vmem:[%s2369_s25 + $0x14] sm:$0x1] }
  0x24   : > { %v1897_v59 = vcombine.low %v236_v41, %v250_v54  ;;  %v300_v61 = vor.u32 %v299_v51, %v296_v50  ;;  %v553_v63 = vsel %vm2474_vm6, %v1916_v52, %v552_v14  ;;  %v1919_v13 = vrot.slane %v526_v45, 9  ;;  %v2288_v45 = vld [vmem:[%s2857_s1 + $0x38] sm:$0xff]  }
  0x25   : > { %v287_v11 = vrot.slane %v286_v56, 4  ;;  %v557_v12 = vsel %vm2474_vm6, %v1917_v58, %v556_v15  ;;  %v1920_v17 = vrot.slane %v527_v46, 9  ;;  %v561_v6 = vsel %vm2474_vm6, %v1918_v0, %v560_v19  ;;  %v2555_v54 = vld [vmem:[%s2369_s25 + $0x1c] sm:$0x1]  ;;  %v1966_v56 = vld [vmem:[%s2369_s25 + $0x20] sm:$0xf] }
  0x26   : > { %2165 = vmatmul.mubr.msk.bf16.vlgmr.msra.gmra.mxu0 %vm336_vm2, %v1897_v59  ;;  %v301_v18 = vrot.slane %v300_v61, 4  ;;  %v1928_v20 = vcombine.low %v553_v63, %v557_v12  ;;  %v1921_v14 = vrot.slane %v528_v53, 9  ;;  %v1906_v15 = vcombine.low %v2372_v4, %v2375_v5  ;;  %v1964_v53 = vld [vmem:[%s2369_s25 + $0x18] sm:$0xf] }
  0x27   : > { %v292_v22 = vsel %vm2410_vm3, %v287_v11, %v291_v47  ;;  %2185 = vmatpush3.bf16.msra.mxu0 %v2364_v3  ;;  %v565_v23 = vsel %vm2474_vm6, %v1919_v13, %v564_v26  ;;  %v2290_v3 = vld [vmem:[%s2857_s1 + $0x48] sm:$0xff]   ;;  %v569_v4 = vsel %vm2474_vm6, %v1920_v17, %v568_v48  ;;  %v1922_v26 = vrot.slane %v529_v9, 9 }
  0x28   : > { %v306_v19 = vsel %vm2410_vm3, %v301_v18, %v305_v57  ;;  %2186 = vmatprep.subr.bf16.mxu0 %v2286_v62  ;;  %2188 = vmatprep.mubr.msk.bf16.mxu0 %vm336_vm2, %v1928_v20  ;;  %v573_v5 = vsel %vm2474_vm6, %v1921_v14, %v572_v49  ;;  %v1929_v32 = vcombine.low %v561_v6, %v565_v23  ;;  %v576_v33 = vrot.slane %v2443_v60, 5  ;;  %v2563_v57 = vld [vmem:[%s2369_s25 + $0x24] sm:$0x1]  ;;  %v2570_v13 = vld [vmem:[%s2857_s1 + $0x68] sm:$0xff]  }
  0x29   : > { %v1899_v31 = vcombine.low %v292_v22, %v306_v19  ;;  %v1923_v34 = vrot.slane %v530_v10, 9  ;;  %v580_v24 = vrot.slane %v2450_v8, 5  ;;  %v844_v37 = vshrl.u32 %v1960_v27, 16  ;;  %v2294_v8 = vld [vmem:[%s2857_s1 + $0x40] sm:$0xff]   ;;  %v2580_v22 = vld [vmem:[%s2857_s1 + $0x58] sm:$0xff]  }
  0x2a   : > { %v847_v48 = vshll.u32 %v1960_v27, 16  ;;  %v853_v25 = vshll.u32 %v2525_v28, 16  ;;  %v1930_v49 = vcombine.low %v569_v4, %v573_v5  ;;  %v858_v38 = vshrl.u32 %v1962_v29, 16  ;;  %v1968_v27 = vld [vmem:[%s2369_s25 + $0x28] sm:$0xf] }
  0x2b   : > { %2169 = vmatmul.mubr.msk.bf16.vlgmr.msra.gmra.mxu1 %vm336_vm2, %v1899_v31  ;;  %2187 = vmatpush3.bf16.msra.mxu0 %v2286_v62  ;;  %v861_v39 = vshll.u32 %v1962_v29, 16  ;;  %v867_v41 = vshll.u32 %v2530_v36, 16  ;;  %v1908_v60 = vcombine.low %v2394_v16, %v2397_v21  ;;  %v846_v42 = vrot.slane %v844_v37, 4  ;;  %v2585_v4 = vld [vmem:[%s2369_s25 + $0x2c] sm:$0x1] }
  0x2c   : > { %2173 = vmatpush3.bf16.msra.mxu1 %v2358_v2  ;;  %2176 = vmatprep.mubr.msk.bf16.mxu1 %vm336_vm2, %v1906_v15  ;;  %v849_v43 = vrot.slane %v847_v48, 5  ;;  %v855_v2 = vrot.slane %v853_v25, 5  ;;  %v860_v46 = vrot.slane %v858_v38, 4  ;;  %v1907_v21 = vcombine.low %v2418_v35, %v2421_v40  ;;  %v2292_v35 = vld [vmem:[%s2857_s1 + $0x30] sm:$0xff]  }
  0x2d   : > { %2174 = vmatprep.subr.bf16.mxu1 %v2285_v7  ;;  %2208 = vmatprep.subr.bf16.mxu0 %v2290_v3  ;;  %v863_v47 = vrot.slane %v861_v39, 5  ;;  %v869_v16 = vrot.slane %v867_v41, 5  ;;  %v577_v50 = vsel %vm2474_vm6, %v1922_v26, %v576_v33  ;;  %v581_v51 = vsel %vm2474_vm6, %v1923_v34, %v580_v24  ;;  %v1970_v5 = vld [vmem:[%s2369_s25 + $0x30] sm:$0xf]  ;;  %v2589_v26 = vld [vmem:[%s2369_s25 + $0x34] sm:$0x1] }
  0x2e   : > { %2189 = vmatmul.mubr.msk.bf16.vlgmr.msra.gmra.mxu0 %vm336_vm2, %v1929_v32  ;;  %v850_v52 = vor.u32 %v849_v43, %v846_v42  ;;  %v872_v58 = vshrl.u32 %v1964_v53, 16  ;;  %v875_v59 = vshll.u32 %v1964_v53, 16  ;;  %v881_v61 = vshll.u32 %v2555_v54, 16  ;;  %v2295_v41 = vld [vmem:[%s2369_s25 + $0x8] ss:$8 sps:$4 sm:$0xff]  }
  0x2f   : > { %2209 = vmatpush3.bf16.msra.mxu0 %v2290_v3  ;;  %2192 = vmatprep.mubr.msk.bf16.mxu0 %vm336_vm2, %v1930_v49  ;;  %v864_v40 = vor.u32 %v863_v47, %v860_v46  ;;  %v886_v63 = vshrl.u32 %v1966_v56, 16  ;;  %v889_v0 = vshll.u32 %v1966_v56, 16  ;;  %v895_v9 = vshll.u32 %v2563_v57, 16 }
  0x30   : > { %2175 = vmatpush3.bf16.msra.mxu1 %v2285_v7  ;;  %2210 = vmatprep.subr.bf16.mxu0 %v2294_v8  ;;  %v851_v62 = vrot.slane %v850_v52, 4  ;;  %v874_v11 = vrot.slane %v872_v58, 4  ;;  %v877_v12 = vrot.slane %v875_v59, 5  ;;  %v1931_v17 = vcombine.low %v577_v50, %v581_v51  ;;  %v2302_v52 = vld [vmem:[%s2857_s1 + $0x60] sm:$0xff]  }
  0x31   : > { %2196 = vmatprep.subr.bf16.mxu1 %v2288_v45  ;;  %v865_v10 = vrot.slane %v864_v40, 4  ;;  %v888_v20 = vrot.slane %v886_v63, 4  ;;  %v891_v6 = vrot.slane %v889_v0, 5  ;;  %v883_v15 = vrot.slane %v881_v61, 5  ;;  %v2297_v63 = vld [vmem:[%s2369_s25 + $0x18] ss:$8 sps:$4 sm:$0xff]  }
  0x32   : > { %v856_v18 = vsel %vm2410_vm3, %v851_v62, %v855_v2  ;;  %v878_v7 = vor.u32 %v877_v12, %v874_v11  ;;  %v897_v23 = vrot.slane %v895_v9, 5  ;;  %v900_v31 = vshrl.u32 %v1968_v27, 16  ;;  %v2606_v2 = vld [vmem:[%s2369_s25 + $0x3c] sm:$0x1]  ;;  %v1990_v12 = vld [vmem:[%s2369_s25 + $0x8] sm:$0xe] }
  0x33   : > { %2177 = vmatmul.mubr.msk.bf16.vlgmr.msra.gmra.mxu1 %vm336_vm2, %v1907_v21  ;;  %2211 = vmatpush3.bf16.msra.mxu0 %v2294_v8  ;;  %v870_v14 = vsel %vm2410_vm3, %v865_v10, %v869_v16  ;;  %v892_v3 = vor.u32 %v891_v6, %v888_v20  ;;  %v903_v32 = vshll.u32 %v1968_v27, 16  ;;  %v909_v33 = vshll.u32 %v2585_v4, 16  ;;  %v1974_v16 = vld [vmem:[%s2369_s25 + $0x40] sm:$0xf]  ;;  %v2610_v21 = vld [vmem:[%s2369_s25 + $0x44] sm:$0x1] }
  0x34   : > { %2197 = vmatpush3.bf16.msra.mxu1 %v2288_v45  ;;  %2180 = vmatprep.mubr.msk.bf16.mxu1 %vm336_vm2, %v1908_v60  ;;  %v1980_v19 = vcombine.low %v856_v18, %v870_v14  ;;  %v879_v29 = vrot.slane %v878_v7, 4  ;;  %v914_v24 = vshrl.u32 %v1970_v5, 16  ;;  %v917_v37 = vshll.u32 %v1970_v5, 16  ;;  %v1972_v45 = vld [vmem:[%s2369_s25 + $0x38] sm:$0xf] }
  0x35   : > { %2198 = vmatprep.subr.bf16.mxu1 %v2292_v35  ;;  %2232 = vmatprep.subr.bf16.mxu0 %v2570_v13  ;;  %v893_v34 = vrot.slane %v892_v3, 4  ;;  %v923_v48 = vshll.u32 %v2589_v26, 16  ;;  %v1909_v25 = vcombine.low %v2438_v55, %v2447_v1  ;;  %v902_v38 = vrot.slane %v900_v31, 4  ;;  %v1991_v6 = vld [vmem:[%s2369_s25 + $0x10] sm:$0xe] }
  0x36   : > { %2193 = vmatmul.mubr.msk.bf16.gmra.mxu0 %vm336_vm2, %v1931_v17  ;;  %v884_v49 = vsel %vm2410_vm3, %v879_v29, %v883_v15  ;;  %v905_v39 = vrot.slane %v903_v32, 5  ;;  %v916_v8 = vrot.slane %v914_v24, 4  ;;  %v919_v42 = vrot.slane %v917_v37, 5  ;;  %v2299_v7 = vld [vmem:[%s2369_s25 + $0x28] ss:$8 sps:$4 sm:$0xff]  }
  0x37   : > { %2212 = vmatprep.mubr.msk.bf16.mxu0 %vm336_vm2, %v1980_v19  ;;  %v898_v60 = vsel %vm2410_vm3, %v893_v34, %v897_v23  ;;  %v911_v55 = vrot.slane %v909_v33, 5  ;;  %v925_v1 = vrot.slane %v923_v48, 5  ;;  %v928_v50 = vshrl.u32 %v1972_v45, 16  ;;  %v2300_v23 = vld [vmem:[%s2857_s1 + $0x50] sm:$0xff]   ;;  %v1992_v33 = vld [vmem:[%s2369_s25 + $0x18] sm:$0xe] }
  0x38   : > { %2199 = vmatpush3.bf16.msra.mxu1 %v2292_v35  ;;  %v906_v43 = vor.u32 %v905_v39, %v902_v38  ;;  %v1981_v46 = vcombine.low %v884_v49, %v898_v60  ;;  %v920_v47 = vor.u32 %v919_v42, %v916_v8  ;;  %v931_v51 = vshll.u32 %v1972_v45, 16  ;;  %v2303_v32 = vld [vmem:[%s2369_s25 + $0x10] ss:$8 sps:$4 sm:$0xff]   ;;  %v2641_v34 = vld [vmem:[%s2857_s1 + $0x88] sm:$0xff]  }
  0x39   : > { %2220 = vmatprep.subr.bf16.mxu1 %v2580_v22  ;;  %v937_v56 = vshll.u32 %v2606_v2, 16  ;;  %v942_v35 = vshrl.u32 %v1974_v16, 16  ;;  %v945_v40 = vshll.u32 %v1974_v16, 16  ;;  %v930_v59 = vrot.slane %v928_v50, 4  ;;  %v1995_v60 = vld [vmem:[%s2369_s25 + $0x30] sm:$0xe] }
  0x3a   : > { %v907_v53 = vrot.slane %v906_v43, 4  ;;  %v921_v58 = vrot.slane %v920_v47, 4  ;;  %v933_v61 = vrot.slane %v931_v51, 5  ;;  %v951_v62 = vshll.u32 %v2610_v21, 16  ;;  %v2301_v42 = vld [vmem:[%s2369_s25 + $0x38] ss:$8 sps:$4 sm:$0xff]  }
  0x3b   : > { %2181 = vmatmul.mubr.msk.bf16.gmra.mxu1 %vm336_vm2, %v1909_v25  ;;  %v939_v9 = vrot.slane %v937_v56, 5  ;;  %v944_v10 = vrot.slane %v942_v35, 4  ;;  %v947_v11 = vrot.slane %v945_v40, 5  ;;  %v1998_v14 = vrot.slane %v1990_v12, 9  ;;  %v2305_v47 = vld [vmem:[%s2369_s25 + $0x20] ss:$8 sps:$4 sm:$0xff]  }
  0x3c   : > { %2200 = vmatprep.mubr.msk.bf16.mxu1 %vm336_vm2, %v2295_v41  ;;  %v912_v0 = vsel %vm2410_vm3, %v907_v53, %v911_v55  ;;  %v926_v17 = vsel %vm2410_vm3, %v921_v58, %v925_v1  ;;  %v934_v18 = vor.u32 %v933_v61, %v930_v59  ;;  %v953_v20 = vrot.slane %v951_v62, 5  ;;  %v1994_v41 = vld [vmem:[%s2369_s25 + $0x28] sm:$0xe]  ;;  %v2307_v53 = vld [vmem:[%s2369_s25 + $0x30] ss:$8 sps:$4 sm:$0xff]  }
  0x3d   : > { %v1982_v15 = vcombine.low %v912_v0, %v926_v17  ;;  %v948_v27 = vor.u32 %v947_v11, %v944_v10  ;;  %v1095_v19 = vrot.slane %v2525_v28, 5  ;;  %v1999_v3 = vrot.slane %v1991_v6, 9  ;;  %v2042_v40 = vld [vmem:[%s2369_s25 + $0x10] sm:$0xf]  ;;  %v2044_v61 = vld [vmem:[%s2369_s25 + $0x18] sm:$0xf] }
  0x3e   : > { %2213 = vmatmul.mubr.msk.bf16.vlgmr.msra.gmra.mxu0 %vm336_vm2, %v1981_v46  ;;  %v935_v5 = vrot.slane %v934_v18, 4  ;;  %v1099_v29 = vrot.slane %v2530_v36, 5  ;;  %v2000_v24 = vrot.slane %v1992_v33, 9  ;;  %v1103_v37 = vrot.slane %v2555_v54, 5  ;;  %v1997_v46 = vld [vmem:[%s2369_s25 + $0x40] sm:$0xe] }
  0x3f   : > { %2233 = vmatpush3.bf16.msra.mxu0 %v2570_v13  ;;  %2216 = vmatprep.mubr.msk.bf16.mxu0 %vm336_vm2, %v1982_v15  ;;  %v949_v31 = vrot.slane %v948_v27, 4  ;;  %v1993_v13 = vld [vmem:[%s2369_s25 + $0x20] sm:$0xe]  ;;  %v1107_v25 = vrot.slane %v2563_v57, 5  ;;  %v1111_v49 = vrot.slane %v2585_v4, 5  ;;  %v1096_v54 = vsel %vm2474_vm6, %v1998_v14, %v1095_v19  ;;  %v2662_v57 = vld [vmem:[%s2857_s1 + $0x78] sm:$0xff]  }
  0x40   : > { %2234 = vmatprep.subr.bf16.mxu0 %v2302_v52  ;;  %v940_v28 = vsel %vm2410_vm3, %v935_v5, %v939_v9  ;;  %v2001_v48 = vrot.slane %v1993_v13, 9  ;;  %v1100_v39 = vsel %vm2474_vm6, %v1999_v3, %v1099_v29  ;;  %v2003_v4 = vrot.slane %v1995_v60, 9  ;;  %v2045_v62 = vld [vmem:[%s2369_s25 + $0x1c] sm:$0x1]  ;;  %v2310_v0 = vld [vmem:[%s2857_s1 + $0x80] sm:$0xff]  }
  0x41   : > { %v954_v36 = vsel %vm2410_vm3, %v949_v31, %v953_v20  ;;  %v1115_v8 = vrot.slane %v2589_v26, 5  ;;  %v2010_v43 = vcombine.low %v1096_v54, %v1100_v39  ;;  %v2671_v55 = vsel %vm2474_vm6, %v2000_v24, %v1103_v37  ;;  %v1996_v26 = vld [vmem:[%s2369_s25 + $0x38] sm:$0xe]  ;;  %v2072_v12 = vld [vmem:[%s2369_s25 + $0x10] sm:$0xe] }
  0x42   : > { %v1983_v38 = vcombine.low %v940_v28, %v954_v36  ;;  %v2675_v1 = vsel %vm2474_vm6, %v2001_v48, %v1107_v25  ;;  %v2004_v50 = vrot.slane %v1996_v26, 9  ;;  %v1119_v51 = vrot.slane %v2606_v2, 5  ;;  %v2073_v6 = vld [vmem:[%s2369_s25 + $0x18] sm:$0xe]  ;;  %v2046_v19 = vld [vmem:[%s2369_s25 + $0x20] sm:$0xf] }
  0x43   : > { %2201 = vmatmul.mubr.msk.bf16.vlgmr.msra.gmra.mxu1 %vm336_vm2, %v2297_v63  ;;  %2235 = vmatpush3.bf16.msra.mxu0 %v2302_v52  ;;  %v2686_v16 = vsel %vm2474_vm6, %v2003_v4, %v1115_v8  ;;  %v2005_v52 = vrot.slane %v1997_v46, 9  ;;  %v1123_v56 = vrot.slane %v2610_v21, 5  ;;  %v2011_v58 = vcombine.low %v2671_v55, %v2675_v1  ;;  %v2043_v21 = vld [vmem:[%s2369_s25 + $0x14] sm:$0x1]  ;;  %v2309_v33 = vld [vmem:[%s2369_s25 + $0x40] ss:$8 sps:$4 sm:$0xff]  }
  0x44   : > { %2221 = vmatpush3.bf16.msra.mxu1 %v2580_v22  ;;  %2204 = vmatprep.mubr.msk.bf16.mxu1 %vm336_vm2, %v2299_v7  ;;  %v2002_v22 = vrot.slane %v1994_v41, 9  ;;  %v2694_v35 = vsel %vm2474_vm6, %v2004_v50, %v1119_v51  ;;  %v1387_v9 = vshrl.u32 %v2042_v40, 16  ;;  %v1390_v10 = vshll.u32 %v2042_v40, 16  ;;  %v2048_v37 = vld [vmem:[%s2369_s25 + $0x28] sm:$0xf] }
  0x45   : > { %2222 = vmatprep.subr.bf16.mxu1 %v2300_v23  ;;  %2256 = vmatprep.subr.bf16.mxu0 %v2641_v34  ;;  %v2704_v59 = vsel %vm2474_vm6, %v2005_v52, %v1123_v56  ;;  %v1396_v11 = vshll.u32 %v2043_v21, 16  ;;  %v1401_v17 = vshrl.u32 %v2044_v61, 16  ;;  %v1404_v18 = vshll.u32 %v2044_v61, 16  ;;  %v2049_v25 = vld [vmem:[%s2369_s25 + $0x2c] sm:$0x1] }
  0x46   : > { %2217 = vmatmul.mubr.msk.bf16.gmra.mxu0 %vm336_vm2, %v1983_v38  ;;  %v2679_v45 = vsel %vm2474_vm6, %v2002_v22, %v1111_v49  ;;  %v2013_v63 = vcombine.low %v2694_v35, %v2704_v59  ;;  %v1410_v20 = vshll.u32 %v2045_v62, 16  ;;  %v2080_v14 = vrot.slane %v2072_v12, 9  ;;  %v2074_v4 = vld [vmem:[%s2369_s25 + $0x20] sm:$0xe]  ;;  %v2075_v1 = vld [vmem:[%s2369_s25 + $0x28] sm:$0xe] }
  0x47   : > { %2236 = vmatprep.mubr.msk.bf16.mxu0 %vm336_vm2, %v2303_v32  ;;  %v2012_v2 = vcombine.low %v2679_v45, %v2686_v16  ;;  %v1389_v7 = vrot.slane %v1387_v9, 4  ;;  %v1392_v15 = vrot.slane %v1390_v10, 5  ;;  %v1638_v27 = vrot.slane %v2043_v21, 5  ;;  %v2047_v32 = vld [vmem:[%s2369_s25 + $0x24] sm:$0x1] }
  0x48   : > { %2223 = vmatpush3.bf16.msra.mxu1 %v2300_v23  ;;  %v1398_v23 = vrot.slane %v1396_v11, 5  ;;  %v1403_v3 = vrot.slane %v1401_v17, 4  ;;  %v1406_v5 = vrot.slane %v1404_v18, 5  ;;  %v1412_v29 = vrot.slane %v1410_v20, 5  ;;  %v2050_v16 = vld [vmem:[%s2369_s25 + $0x30] sm:$0xf] }
  0x49   : > { %2244 = vmatprep.subr.bf16.mxu1 %v2662_v57  ;;  %v2081_v31 = vrot.slane %v2073_v6, 9  ;;  %v1393_v13 = vor.u32 %v1392_v15, %v1389_v7  ;;  %v1639_v28 = vsel %vm2474_vm6, %v2080_v14, %v1638_v27  ;;  %v1642_v24 = vrot.slane %v2045_v62, 5  ;;  %v2051_v56 = vld [vmem:[%s2369_s25 + $0x34] sm:$0x1]  ;;  %v2052_v40 = vld [vmem:[%s2369_s25 + $0x38] sm:$0xf] }
  0x4a   : > { %v1415_v36 = vshrl.u32 %v2046_v19, 16  ;;  %v1407_v48 = vor.u32 %v1406_v5, %v1403_v3  ;;  %v1418_v49 = vshll.u32 %v2046_v19, 16  ;;  %v1424_v38 = vshll.u32 %v2047_v32, 16  ;;  %v2053_v11 = vld [vmem:[%s2369_s25 + $0x3c] sm:$0x1] }
  0x4b   : > { %2205 = vmatmul.mubr.msk.bf16.gmra.mxu1 %vm336_vm2, %v2301_v42  ;;  %v1429_v54 = vshrl.u32 %v2048_v37, 16  ;;  %v1394_v39 = vrot.slane %v1393_v13, 4  ;;  %v1643_v41 = vsel %vm2474_vm6, %v2081_v31, %v1642_v24  ;;  %v1432_v22 = vshll.u32 %v2048_v37, 16  ;;  %v2076_v15 = vld [vmem:[%s2369_s25 + $0x30] sm:$0xe] }
  0x4c   : > { %2224 = vmatprep.mubr.msk.bf16.mxu1 %vm336_vm2, %v2010_v43  ;;  %v1417_v60 = vrot.slane %v1415_v36, 4  ;;  %v1408_v8 = vrot.slane %v1407_v48, 4  ;;  %v2092_v42 = vcombine.low %v1639_v28, %v1643_v41  ;;  %v1420_v43 = vrot.slane %v1418_v49, 5  ;;  %v2055_v28 = vld [vmem:[%s2369_s25 + $0x44] sm:$0x1] }
  0x4d   : > { %v1426_v55 = vrot.slane %v1424_v38, 5  ;;  %v1399_v45 = vsel %vm2410_vm3, %v1394_v39, %v1398_v23  ;;  %v1431_v26 = vrot.slane %v1429_v54, 4  ;;  %v1434_v46 = vrot.slane %v1432_v22, 5  ;;  %v2077_v23 = vld [vmem:[%s2369_s25 + $0x38] sm:$0xe] }
  0x4e   : > { %2237 = vmatmul.mubr.msk.bf16.vlgmr.msra.gmra.mxu0 %vm336_vm2, %v2305_v47  ;;  %v1438_v47 = vshll.u32 %v2049_v25, 16  ;;  %v1413_v50 = vsel %vm2410_vm3, %v1408_v8, %v1412_v29  ;;  %v1421_v51 = vor.u32 %v1420_v43, %v1417_v60  ;;  %v2082_v52 = vrot.slane %v2074_v4, 9  ;;  %v2054_v29 = vld [vmem:[%s2369_s25 + $0x40] sm:$0xf]  ;;  %v2056_v48 = vld [vmem:[%s2369_s25 + $0x48] sm:$0xf] }
  0x4f   : > { %2257 = vmatpush3.bf16.msra.mxu0 %v2641_v34  ;;  %2240 = vmatprep.mubr.msk.bf16.mxu0 %vm336_vm2, %v2307_v53  ;;  %v2308_v34 = vld [vmem:[%s2857_s1 + $0x70] sm:$0xff]   ;;  %v1646_v53 = vrot.slane %v2047_v32, 5  ;;  %v2083_v21 = vrot.slane %v2075_v1, 9  ;;  %v1443_v9 = vshrl.u32 %v2050_v16, 16  ;;  %v1446_v12 = vshll.u32 %v2050_v16, 16 }
  0x50   : > { %2258 = vmatprep.subr.bf16.mxu0 %v2310_v0  ;;  %v1422_v61 = vrot.slane %v1421_v51, 4  ;;  %v1452_v17 = vshll.u32 %v2051_v56, 16  ;;  %v1457_v18 = vshrl.u32 %v2052_v40, 16  ;;  %v1460_v7 = vshll.u32 %v2052_v40, 16  ;;  %v2057_v54 = vld [vmem:[%s2369_s25 + $0x4c] sm:$0x1] }
  0x51   : > { %v1647_v62 = vsel %vm2474_vm6, %v2082_v52, %v1646_v53  ;;  %v1445_v14 = vrot.slane %v1443_v9, 4  ;;  %v1448_v3 = vrot.slane %v1446_v12, 5  ;;  %v1466_v13 = vshll.u32 %v2053_v11, 16 }
  0x52   : > { %v1427_v20 = vsel %vm2410_vm3, %v1422_v61, %v1426_v55  ;;  %v1454_v5 = vrot.slane %v1452_v17, 5  ;;  %v1459_v32 = vrot.slane %v1457_v18, 4  ;;  %v2084_v37 = vrot.slane %v2076_v15, 9 }
  0x53   : > { %2225 = vmatmul.mubr.msk.bf16.vlgmr.msra.gmra.mxu1 %vm336_vm2, %v2011_v58  ;;  %2259 = vmatpush3.bf16.msra.mxu0 %v2310_v0  ;;  %v1435_v58 = vor.u32 %v1434_v46, %v1431_v26  ;;  %v1650_v0 = vrot.slane %v2049_v25, 5  ;;  %v1449_v24 = vor.u32 %v1448_v3, %v1445_v14  ;;  %v1654_v36 = vrot.slane %v2051_v56, 5 }
  0x54   : > { %2245 = vmatpush3.bf16.msra.mxu1 %v2662_v57  ;;  %2228 = vmatprep.mubr.msk.bf16.mxu1 %vm336_vm2, %v2012_v2  ;;  %v2062_v57 = vcombine.low %v1399_v45, %v1413_v50  ;;  %v1440_v2 = vrot.slane %v1438_v47, 5  ;;  %v1468_v49 = vrot.slane %v1466_v13, 5  ;;  %v1658_v38 = vrot.slane %v2053_v11, 5  ;;  %v2079_v45 = vld [vmem:[%s2369_s25 + $0x48] sm:$0xe] }
  0x55   : > { %2246 = vmatprep.subr.bf16.mxu1 %v2308_v34  ;;  %v1436_v10 = vrot.slane %v1435_v58, 4  ;;  %v1651_v6 = vsel %vm2474_vm6, %v2083_v21, %v1650_v0  ;;  %v1471_v35 = vshrl.u32 %v2054_v29, 16  ;;  %v1450_v59 = vrot.slane %v1449_v24, 4 }
  0x56   : > { %2241 = vmatmul.mubr.msk.bf16.gmra.mxu0 %vm336_vm2, %v2309_v33  ;;  %v2093_v19 = vcombine.low %v1647_v62, %v1651_v6  ;;  %v1462_v33 = vrot.slane %v1460_v7, 5  ;;  %v1474_v39 = vshll.u32 %v2054_v29, 16  ;;  %v1480_v41 = vshll.u32 %v2055_v28, 16 }
  0x57   : > { %2260 = vmatprep.mubr.msk.bf16.mxu0 %vm336_vm2, %v2092_v42  ;;  %v1441_v27 = vsel %vm2410_vm3, %v1436_v10, %v1440_v2  ;;  %v1473_v4 = vrot.slane %v1471_v35, 4  ;;  %v1485_v8 = vshrl.u32 %v2056_v48, 16  ;;  %v2078_v42 = vld [vmem:[%s2369_s25 + $0x40] sm:$0xe]  ;;  %v1455_v43 = vsel %vm2410_vm3, %v1450_v59, %v1454_v5 }
  0x58   : > { %2247 = vmatpush3.bf16.msra.mxu1 %v2308_v34  ;;  %v2063_v31 = vcombine.low %v1427_v20, %v1441_v27  ;;  %v2085_v34 = vrot.slane %v2077_v23, 9  ;;  %v1463_v25 = vor.u32 %v1462_v33, %v1459_v32  ;;  %v1476_v1 = vrot.slane %v1474_v39, 5 }
  0x59   : > { %v1487_v46 = vrot.slane %v1485_v8, 4  ;;  %v1488_v47 = vshll.u32 %v2056_v48, 16  ;;  %v1494_v16 = vshll.u32 %v2057_v54, 16  ;;  %v2086_v52 = vrot.slane %v2078_v42, 9 }
  0x5a   : > { %v1464_v60 = vrot.slane %v1463_v25, 4  ;;  %v1659_v22 = vsel %vm2474_vm6, %v2085_v34, %v1658_v38  ;;  %v1477_v51 = vor.u32 %v1476_v1, %v1473_v4  ;;  %v1662_v53 = vrot.slane %v2055_v28, 5 }
  0x5b   : > { %2229 = vmatmul.mubr.msk.bf16.gmra.mxu1 %vm336_vm2, %v2013_v63  ;;  %v1655_v63 = vsel %vm2474_vm6, %v2084_v37, %v1654_v36  ;;  %v1482_v56 = vrot.slane %v1480_v41, 5  ;;  %v1490_v40 = vrot.slane %v1488_v47, 5  ;;  %v1666_v58 = vrot.slane %v2057_v54, 5 }
  0x5c   : > { %2248 = vmatprep.mubr.msk.bf16.mxu1 %vm336_vm2, %v2062_v57  ;;  %v2094_v55 = vcombine.low %v1655_v63, %v1659_v22  ;;  %v1469_v26 = vsel %vm2410_vm3, %v1464_v60, %v1468_v49  ;;  %v2087_v57 = vrot.slane %v2079_v45, 9  ;;  %v1478_v2 = vrot.slane %v1477_v51, 4 }
  0x5d   : > { %v2064_v50 = vcombine.low %v1455_v43, %v1469_v26  ;;  %v1663_v21 = vsel %vm2474_vm6, %v2086_v52, %v1662_v53  ;;  %v1491_v61 = vor.u32 %v1490_v40, %v1487_v46  ;;  %v1496_v62 = vrot.slane %v1494_v16, 5 }
  0x5e   : > { %2261 = vmatmul.mubr.msk.bf16.vlgmr.msra.gmra.mxu0 %vm336_vm2, %v2093_v19  ;;  %v1667_v0 = vsel %vm2474_vm6, %v2087_v57, %v1666_v58  ;;  %v1483_v10 = vsel %vm2410_vm3, %v1478_v2, %v1482_v56 }
  0x5f   : > { %2264 = vmatprep.mubr.msk.bf16.mxu0 %vm336_vm2, %v2094_v55  ;;  %v2095_v9 = vcombine.low %v1663_v21, %v1667_v0  ;;  %v1492_v11 = vrot.slane %v1491_v61, 4 }
  0x61   : > { %v1497_v12 = vsel %vm2410_vm3, %v1492_v11, %v1496_v62 }
  0x62   : > { %v2065_v17 = vcombine.low %v1483_v10, %v1497_v12 }
  0x63   : > { %2249 = vmatmul.mubr.msk.bf16.vlgmr.msra.gmra.mxu1 %vm336_vm2, %v2063_v31 }
  0x64   : > { %2252 = vmatprep.mubr.msk.bf16.mxu1 %vm336_vm2, %v2064_v50 }
  0x66   : > { %2265 = vmatmul.mubr.msk.bf16.gmra.mxu0 %vm336_vm2, %v2095_v9 }
  0x6b   : > { %2253 = vmatmul.mubr.msk.bf16.gmra.mxu1 %vm336_vm2, %v2065_v17 }
  0xe6   : > { %v2166_v18 = vpop.f32.mrf.mxu0 }
  0xe8   : > { %v383_v20 = vpop.f32.mrf.mxu0 }
  0xea   : > { %v2167_v6 = vpop.f32.mrf.mxu0 }
  0xeb   : > { %v2170_v14 = vpop.f32.mrf.mxu1 }
  0xec   : > { %v386_v7 = vpop.f32.mrf.mxu0 }
  0xed   : > { %v399_v44 = vpop.f32.mrf.mxu1 }
  0xee   : > { %v2190_v15 = vpop.f32.mrf.mxu0 }
  0xef   : > { %v2790_v23 = vpop.f32.mrf.mxu1 }
  0xf0   : > { %v657_v27 = vpop.f32.mrf.mxu0 }
  0xf1   : > { %v2792_v19 = vpop.f32.mrf.mxu1 }
  0xf2   : > { %v2191_v3 = vpop.f32.mrf.mxu0 }
  0xf3   : > { %v2178_v5 = vpop.f32.mrf.mxu1 }
  0xf4   : > { %v660_v29 = vpop.f32.mrf.mxu0  ;;  %v501_v26 = vadd.f32 %v2178_v5, %v2166_v18 }
  0xf5   : > { %v492_v30 = vpop.f32.mrf.mxu1 }
  0xf6   : > { %v2194_v31 = vpop.f32.mrf.mxu0  ;;  %v493_v16 = vadd.f32 %v492_v30, %v383_v20  ;;  %v690_v52 = vadd.f32 %v2190_v15, %v501_v26 }
  0xf7   : > { %v2179_v32 = vpop.f32.mrf.mxu1 }
  0xf8   : > { %v673_v33 = vpop.f32.mrf.mxu0  ;;  %v504_v53 = vadd.f32 %v2179_v32, %v2167_v6  ;;  %v688_v57 = vadd.f32 %v657_v27, %v493_v16 }
  0xf9   : > { %v495_v13 = vpop.f32.mrf.mxu1 }
  0xfa   : > { %v2794_v28 = vpop.f32.mrf.mxu0  ;;  %v496_v21 = vadd.f32 %v495_v13, %v386_v7  ;;  %v691_v62 = vadd.f32 %v2191_v3, %v504_v53 }
  0xfb   : > { %v2182_v24 = vpop.f32.mrf.mxu1 }
  0xfc   : > { %v2796_v37 = vpop.f32.mrf.mxu0  ;;  %v517_v10 = vadd.f32 %v2182_v24, %v2170_v14  ;;  %v689_v20 = vadd.f32 %v660_v29, %v496_v21 }
  0xfd   : > { %v508_v36 = vpop.f32.mrf.mxu1 }
  0xfe   : > { %v2214_v34 = vpop.f32.mrf.mxu0  ;;  %v509_v6 = vadd.f32 %v508_v36, %v399_v44  ;;  %v694_v32 = vadd.f32 %v2194_v31, %v517_v10 }
  0xff   : > { %v2183_v48 = vpop.f32.mrf.mxu1 }
 0x100   : > { %v1030_v25 = vpop.f32.mrf.mxu0  ;;  %v520_v7 = vadd.f32 %v2183_v48, %v2790_v23  ;;  %v692_v14 = vadd.f32 %v673_v33, %v509_v6 }
 0x101   : > { %v511_v49 = vpop.f32.mrf.mxu1 }
 0x102   : > { %v2215_v38 = vpop.f32.mrf.mxu0  ;;  %v512_v24 = vadd.f32 %v511_v49, %v2792_v19  ;;  %v695_v36 = vadd.f32 %v2794_v28, %v520_v7  ;;  %v2821_v19 = vld [vmem:[%s2858_s2] ss:$0 sm:$0xff] }
 0x103   : > { %v2202_v35 = vpop.f32.mrf.mxu1 }
 0x104   : > { %v1033_v59 = vpop.f32.mrf.mxu0  ;;  %v821_v58 = vadd.f32 %v2202_v35, %v690_v52 }
 0x105   : > { %v788_v63 = vpop.f32.mrf.mxu1 }
 0x106   : > { %v2218_v54 = vpop.f32.mrf.mxu0  ;;  %v819_v0 = vadd.f32 %v788_v63, %v688_v57  ;;  %v1063_v12 = vadd.f32 %v2214_v34, %v821_v58 }
 0x107   : > { %v2203_v39 = vpop.f32.mrf.mxu1 }
 0x108   : > { %v2798_v41 = vpop.f32.mrf.mxu0  ;;  %v822_v17 = vadd.f32 %v2203_v39, %v691_v62  ;;  %v1061_v5 = vadd.f32 %v1030_v25, %v819_v0 }
 0x109   : > { %v791_v60 = vpop.f32.mrf.mxu1 }
 0x10a   : > { %v2800_v22 = vpop.f32.mrf.mxu0  ;;  %v820_v13 = vadd.f32 %v791_v60, %v689_v20  ;;  %v1064_v35 = vadd.f32 %v2215_v38, %v822_v17  ;;  %v693_v38 = vadd.f32 %v2796_v37, %v512_v24 }
 0x10b   : > { %v2206_v4 = vpop.f32.mrf.mxu1 }
 0x10c   : > { %v2802_v8 = vpop.f32.mrf.mxu0  ;;  %v825_v34 = vadd.f32 %v2206_v4, %v694_v32  ;;  %v1062_v25 = vadd.f32 %v1033_v59, %v820_v13 }
 0x10d   : > { %v804_v42 = vpop.f32.mrf.mxu1 }
 0x10e   : > { %v2238_v43 = vpop.f32.mrf.mxu0  ;;  %v1067_v60 = vadd.f32 %v2218_v54, %v825_v34 }
 0x10f   : > { %v2207_v55 = vpop.f32.mrf.mxu1 }
 0x110   : > { %v1331_v1 = vpop.f32.mrf.mxu0 }
 0x111   : > { %v807_v45 = vpop.f32.mrf.mxu1 }
 0x112   : > { %v2239_v46 = vpop.f32.mrf.mxu0  ;;  %v824_v52 = vadd.f32 %v807_v45, %v693_v38 }
 0x113   : > { %v2226_v47 = vpop.f32.mrf.mxu1 }
 0x114   : > { %v2804_v50 = vpop.f32.mrf.mxu0  ;;  %v1233_v27 = vadd.f32 %v2226_v47, %v1063_v12  ;;  %v823_v47 = vadd.f32 %v804_v42, %v692_v14  ;;  %v1066_v62 = vadd.f32 %v2802_v8, %v824_v52 }
 0x115   : > { %v1200_v51 = vpop.f32.mrf.mxu1 }
 0x116   : > { %v2806_v56 = vpop.f32.mrf.mxu0  ;;  %v1231_v63 = vadd.f32 %v1200_v51, %v1061_v5  ;;  %v1364_v16 = vadd.f32 %v2238_v43, %v1233_v27  ;;  %v826_v51 = vadd.f32 %v2207_v55, %v695_v36  ;;  %v1065_v42 = vadd.f32 %v2798_v41, %v823_v47 }
 0x117   : > { %v2227_v40 = vpop.f32.mrf.mxu1 }
 0x118   : > { %v2808_v2 = vpop.f32.mrf.mxu0  ;;  %v1234_v29 = vadd.f32 %v2227_v40, %v1064_v35  ;;  %v1362_v23 = vadd.f32 %v1331_v1, %v1231_v63  ;;  %v1068_v40 = vadd.f32 %v2800_v22, %v826_v51 }
 0x119   : > { %v1203_v61 = vpop.f32.mrf.mxu1 }
 0x11a   : > { %v2810_v9 = vpop.f32.mrf.mxu0  ;;  %v1232_v33 = vadd.f32 %v1203_v61, %v1062_v25  ;;  %v1365_v43 = vadd.f32 %v2239_v46, %v1234_v29 }
 0x11b   : > { %v2230_v11 = vpop.f32.mrf.mxu1 }
 0x11c   : > { %v2812_v18 = vpop.f32.mrf.mxu0  ;;  %v1237_v1 = vadd.f32 %v2230_v11, %v1067_v60  ;;  %v1363_v57 = vadd.f32 %v2804_v50, %v1232_v33 }
 0x11d   : > { %v1216_v15 = vpop.f32.mrf.mxu1 }
 0x11e   : > { %v2262_v30 = vpop.f32.mrf.mxu0  ;;  %v1235_v58 = vadd.f32 %v1216_v15, %v1065_v42  ;;  %v1368_v22 = vadd.f32 %v2806_v56, %v1237_v1 }
 0x11f   : > { %v2231_v3 = vpop.f32.mrf.mxu1 }
 0x120   : > { %v1743_v26 = vpop.f32.mrf.mxu0  ;;  %v1238_v0 = vadd.f32 %v2231_v3, %v1068_v40  ;;  %v1366_v20 = vadd.f32 %v2808_v2, %v1235_v58 }
 0x121   : > { %v1219_v39 = vpop.f32.mrf.mxu1 }
 0x122   : > { %v2263_v44 = vpop.f32.mrf.mxu0  ;;  %v1236_v27 = vadd.f32 %v1219_v39, %v1066_v62  ;;  %v1369_v3 = vadd.f32 %v2810_v9, %v1238_v0 }
 0x123   : > { %v2250_v31 = vpop.f32.mrf.mxu1 }
 0x124   : > { %v1606_v48 = vadd.f32 %v2250_v31, %v1364_v16  ;;  %v1746_v4 = vpop.f32.mrf.mxu0  ;;  %v1367_v34 = vadd.f32 %v2812_v18, %v1236_v27 }
 0x125   : > { %v1573_v49 = vpop.f32.mrf.mxu1 }
 0x126   : > { %v1776_v28 = vadd.f32 %v2262_v30, %v1606_v48  ;;  %v1604_v59 = vadd.f32 %v1573_v49, %v1362_v23  ;;  %v2266_v61 = vpop.f32.mrf.mxu0 }
 0x127   : > { %v2251_v53 = vpop.f32.mrf.mxu1 }
 0x128   : > { %v1791_v37 = vadd.f32 %v2821_v19, %v1776_v28  ;;  %v1774_v54 = vadd.f32 %v1743_v26, %v1604_v59  ;;  %v1607_v55 = vadd.f32 %v2251_v53, %v1365_v43  ;;  %v1759_v5 = vpop.f32.mrf.mxu0 }
 0x129   : > { %v1576_v21 = vpop.f32.mrf.mxu1 }
 0x12a   : > { %vm1799_vm7 = vcmp.ge.f32.partialorder %v1791_v37, 0.0  ;;  %v1807_v41 = vmul.f32 0.1, %v1791_v37  ;;  %v1789_v45 = vadd.f32 %v2821_v19, %v1774_v54  ;;  %v1777_v46 = vadd.f32 %v2263_v44, %v1607_v55  ;;  %v2267_v24 = vpop.f32.mrf.mxu0 }
 0x12b   : > { %v1605_v50 = vadd.f32 %v1576_v21, %v1363_v57  ;;  %v2254_v17 = vpop.f32.mrf.mxu1 }
 0x12c   : > { %v1815_v10 = vsel %vm1799_vm7, %v1791_v37, %v1807_v41  ;;  %vm1797_vm8 = vcmp.ge.f32.partialorder %v1789_v45, 0.0  ;;  %v1805_v11 = vmul.f32 0.1, %v1789_v45  ;;  %v1792_v12 = vadd.f32 %v2821_v19, %v1777_v46  ;;  %v1762_v23 = vpop.f32.mrf.mxu0 }
 0x12d   : > { %1823 = vst [vmem:[%s2831_s7 + $0x10] sm:$0xff] %v1815_v10  ;;  %v1775_v6 = vadd.f32 %v1746_v4, %v1605_v50  ;;  %v1610_v15 = vadd.f32 %v2254_v17, %v1368_v22  ;;  %v1589_v30 = vpop.f32.mrf.mxu1 }
 0x12e   : > { %v1813_v8 = vsel %vm1797_vm8, %v1789_v45, %v1805_v11  ;;  %vm1800_vm9 = vcmp.ge.f32.partialorder %v1792_v12, 0.0  ;;  %v1808_v56 = vmul.f32 0.1, %v1792_v12  ;;  %v1608_v13 = vadd.f32 %v1589_v30, %v1366_v20 }
 0x12f   : > { %1821 = vst [vmem:[%s2831_s7] sm:$0xff] %v1813_v8  ;;  %v1790_v32 = vadd.f32 %v2821_v19, %v1775_v6  ;;  %v1780_v7 = vadd.f32 %v2266_v61, %v1610_v15  ;;  %v2255_v2 = vpop.f32.mrf.mxu1 }
 0x130   : > { %v1816_v35 = vsel %vm1800_vm9, %v1792_v12, %v1808_v56  ;;  %v1778_v14 = vadd.f32 %v1759_v5, %v1608_v13  ;;  %v1611_v39 = vadd.f32 %v2255_v2, %v1369_v3 }
 0x131   : > { %1824 = vst [vmem:[%s2831_s7 + $0x18] sm:$0xff] %v1816_v35  ;;  %vm1798_vm10 = vcmp.ge.f32.partialorder %v1790_v32, 0.0  ;;  %v1806_v63 = vmul.f32 0.1, %v1790_v32  ;;  %v1795_v26 = vadd.f32 %v2821_v19, %v1780_v7  ;;  %v1592_v16 = vpop.f32.mrf.mxu1 }
 0x132   : > { %v1793_v9 = vadd.f32 %v2821_v19, %v1778_v14  ;;  %v1781_v36 = vadd.f32 %v2267_v24, %v1611_v39  ;;  %v1609_v25 = vadd.f32 %v1592_v16, %v1367_v34 }
 0x133   : > { %v1814_v29 = vsel %vm1798_vm10, %v1790_v32, %v1806_v63  ;;  %vm1803_vm11 = vcmp.ge.f32.partialorder %v1795_v26, 0.0  ;;  %v1811_v44 = vmul.f32 0.1, %v1795_v26 }
 0x134   : > { %1822 = vst [vmem:[%s2831_s7 + $0x8] sm:$0xff] %v1814_v29  ;;  %vm1801_vm12 = vcmp.ge.f32.partialorder %v1793_v9, 0.0  ;;  %v1809_v31 = vmul.f32 0.1, %v1793_v9  ;;  %v1796_v18 = vadd.f32 %v2821_v19, %v1781_v36  ;;  %v1779_v48 = vadd.f32 %v1762_v23, %v1609_v25 }
 0x135   : > { %v1819_v47 = vsel %vm1803_vm11, %v1795_v26, %v1811_v44 }
 0x136   : > { %1827 = vst [vmem:[%s2831_s7 + $0x30] sm:$0xff] %v1819_v47  ;;  %v1817_v38 = vsel %vm1801_vm12, %v1793_v9, %v1809_v31  ;;  %vm1804_vm13 = vcmp.ge.f32.partialorder %v1796_v18, 0.0  ;;  %v1812_v60 = vmul.f32 0.1, %v1796_v18  ;;  %v1794_v51 = vadd.f32 %v2821_v19, %v1779_v48 }
 0x137   : > { %1825 = vst [vmem:[%s2831_s7 + $0x20] sm:$0xff] %v1817_v38 }
 0x138   : > { %v1820_v33 = vsel %vm1804_vm13, %v1796_v18, %v1812_v60  ;;  %vm1802_vm14 = vcmp.ge.f32.partialorder %v1794_v51, 0.0  ;;  %v1810_v49 = vmul.f32 0.1, %v1794_v51 }
 0x139   : > { %1828 = vst [vmem:[%s2831_s7 + $0x38] sm:$0xff] %v1820_v33 }
 0x13a   : > { %v1818_v4 = vsel %vm1802_vm14, %v1794_v51, %v1810_v49 }
 0x13b   : > { %1826 = vst [vmem:[%s2831_s7 + $0x28] sm:$0xff] %v1818_v4 }
 0x13c PF: > { %s13_s12 = sadd.s32 1, %s2317_s12  }
 0x13d   : > { %p10_p4 = scmp.ge.s32.totalorder %s13_s12, 4  }
 0x13f   :  { %12 = sbr.rel (!%p10_p4) target bundleno = 1 (0x1), region = 72 }

</bundles_post_ra>
